<compile_context>
chip_gen: v5e
topology: v5e:2x2
jax: 0.10.0
libtpu: 0.0.40
codegen_flags: <defaults>
</compile_context>

<pallas_src>
import functools
import math

import numpy as np
import jax
import jax.numpy as jnp
from jax import lax
from jax.experimental import pallas as pl
from jax.experimental.pallas import tpu as pltpu

_LANE_PAD = 128  # zero border (in lanes) around the flattened-spatial scratch


# ---------------------------------------------------------------------------
# In-kernel helpers
# ---------------------------------------------------------------------------
def _zero_scratch_borders(pscr_ref, pad, p_out):
    """Zero only the lane borders of the padded scratch (interior is rewritten)."""
    rows = pscr_ref.shape[0]
    zeros = jnp.zeros((rows, pad), dtype=pscr_ref.dtype)
    pscr_ref[:, 0:pad] = zeros
    pscr_ref[:, pad + p_out:2 * pad + p_out] = zeros


def _fill_taps(pscr_ref, mask_ref, xs_ref, *, col, c_in, p_out, taps, pad):
    """im2col tap stack for one image into xs_ref[:, col:col+p_out] (col 128-aligned)."""
    for t, (phase, shift, need_mask) in enumerate(taps):
        win = pscr_ref[phase * c_in:(phase + 1) * c_in,
                       pad + shift:pad + shift + p_out]
        if need_mask:  # statically skipped for taps covered by the zero border
            win = win * mask_ref[t:t + 1, :]
        xs_ref[t * c_in:(t + 1) * c_in, col:col + p_out] = win


def _conv_stats_tail(w_ref, xs_ref, y_ref, stats_ref, *, n_tile, p_out, pop):
    """One wide MXU matmul + merged sum/sumsq stats + per-image output stores."""
    acc = jnp.dot(w_ref[...], xs_ref[...], preferred_element_type=jnp.float32)
    stats_ref[0, :, 0:1] = jnp.sum(acc, axis=1, keepdims=True)
    stats_ref[0, :, 1:2] = jnp.sum(acc * acc, axis=1, keepdims=True)
    y_wide = acc.astype(y_ref.dtype)
    for n_i in range(n_tile):
        y_ref[n_i] = y_wide[:, n_i * pop:n_i * pop + p_out]


def _conv1_stats_kernel(x_ref, w_ref, mask_ref, y_ref, stats_ref,
                        pscr_ref, xs_ref, *,
                        n_tile, c_in, p_out, pop, taps, pad, cdt):
    """conv1 (any stride via pre-built phases) + batch sum / sum-of-squares."""
    _zero_scratch_borders(pscr_ref, pad, p_out)
    if pop != p_out:  # keep alignment-pad columns zero so stats stay exact
        xs_ref[...] = jnp.zeros(xs_ref.shape, xs_ref.dtype)
    for n_i in range(n_tile):  # loop only fills scratch refs (no big live values)
        pscr_ref[:, pad:pad + p_out] = x_ref[n_i].astype(cdt)
        _fill_taps(pscr_ref, mask_ref, xs_ref, col=n_i * pop,
                   c_in=c_in, p_out=p_out, taps=taps, pad=pad)
    _conv_stats_tail(w_ref, xs_ref, y_ref, stats_ref,
                     n_tile=n_tile, p_out=p_out, pop=pop)


def _bn_relu_conv2_stats_kernel(y1_ref, scale_ref, shift_ref, w_ref, mask_ref,
                                y2_ref, stats_ref, pscr_ref, xs_ref, *,
                                n_tile, c_in, p_out, pop, taps, pad, cdt):
    """bn1 (pre-folded scale/shift, f32) -> relu -> conv2 (stride 1) + stats.

    Note: bn1 stats came from the f32 conv1 accumulator while bn1 is applied to
    the (possibly bf16-rounded) stored y1 - a tiny, benign inconsistency.
    """
    _zero_scratch_borders(pscr_ref, pad, p_out)
    if pop != p_out:
        xs_ref[...] = jnp.zeros(xs_ref.shape, xs_ref.dtype)
    for n_i in range(n_tile):
        h = y1_ref[n_i].astype(jnp.float32) * scale_ref[...] + shift_ref[...]
        pscr_ref[:, pad:pad + p_out] = jnp.maximum(h, 0.0).astype(cdt)
        _fill_taps(pscr_ref, mask_ref, xs_ref, col=n_i * pop,
                   c_in=c_in, p_out=p_out, taps=taps, pad=pad)
    _conv_stats_tail(w_ref, xs_ref, y2_ref, stats_ref,
                     n_tile=n_tile, p_out=p_out, pop=pop)


def _bn_add_relu_kernel(y2_ref, scale_ref, shift_ref, sc_ref, out_ref, *,
                        n_tile, pad_c):
    """bn2 (pre-folded) + shortcut add (option-A channel pad in-kernel) + relu."""
    p_out = out_ref.shape[2]
    scale = scale_ref[...]
    shift = shift_ref[...]
    for n_i in range(n_tile):
        o = y2_ref[n_i].astype(jnp.float32) * scale + shift
        sc = sc_ref[n_i].astype(jnp.float32)
        if pad_c:
            z = jnp.zeros((pad_c, p_out), jnp.float32)
            sc = jnp.concatenate([z, sc, z], axis=0)
        out_ref[n_i] = jnp.maximum(o + sc, 0.0).astype(out_ref.dtype)


# ---------------------------------------------------------------------------
# Wrapper-side helpers (all tiny / static; no big HBM passes)
# ---------------------------------------------------------------------------
def _tap_plan(h_in, w_in, h_out, w_out, stride, dtype):
    """Static per-tap (phase, lane shift, need_mask) + (9, Po) validity mask.

    need_mask is False when every invalid output position reads from the
    zeroed lane border of the per-image scratch (so the multiply is skipped).
    """
    p_out = h_out * w_out
    ho = np.arange(h_out).reshape(h_out, 1)
    wo = np.arange(w_out).reshape(1, w_out)
    out_pos = (ho * w_out + wo).reshape(-1)
    taps, masks = [], []
    for kh in range(3):
        for kw in range(3):
            dh, dw = kh - 1, kw - 1
            phase = (dh % stride) * stride + (dw % stride)
            shift = (dh // stride) * w_out + (dw // stride)
            h_src = stride * ho + dh
            w_src = stride * wo + dw
            valid = ((h_src >= 0) & (h_src < h_in) &
                     (w_src >= 0) & (w_src < w_in)).reshape(-1)
            in_interior = (out_pos + shift >= 0) & (out_pos + shift < p_out)
            need_mask = bool(np.any(~valid & in_interior))
            taps.append((phase, shift, need_mask))
            masks.append(valid.astype(np.float32).reshape(1, p_out))
    mask = jnp.asarray(np.concatenate(masks, axis=0), dtype=dtype)
    return taps, mask


def _bn_scale_shift(stats, gamma, beta, count, eps):
    """Fold training-mode batch stats (biased variance) into scale/shift.

    One-pass E[x^2]-E[x]^2 in f32; guarded against tiny negative variance.
    TODO(synk): switch to Welford/two-pass if |mean| >> std at realistic scales.
    """
    s = jnp.sum(stats[:, :, 0], axis=0)
    sq = jnp.sum(stats[:, :, 1], axis=0)
    mean = s / count
    var = jnp.maximum(sq / count - mean * mean, 0.0)
    scale = gamma.astype(jnp.float32) * lax.rsqrt(var + eps)
    shift = beta.astype(jnp.float32) - mean * scale
    return scale.reshape(-1, 1), shift.reshape(-1, 1)


def _nbytes(shape, dtype):
    return math.prod(shape) * jnp.dtype(dtype).itemsize


def _vmem_limit(*nbytes):
    # x2 for double buffering + headroom; capped well below v7x's 64 MiB/TC.
    est = 2 * sum(nbytes) + (4 << 20)
    return int(min(max(est, 16 << 20), 48 << 20))


def _pick_n_tile(n, per_image_bytes, target_bytes=4 << 20, max_tile=16):
    """Large batch tiles (~4 MiB) but keep >=2 grid steps for megacore/v7x."""
    cap = min(n, max_tile, max(1, target_bytes // max(per_image_bytes, 1)))
    if n >= 2:
        cap = min(cap, n // 2)
    t = max(int(cap), 1)
    while n % t:
        t -= 1
    return t


# ---------------------------------------------------------------------------
# Forward pass
# ---------------------------------------------------------------------------
@functools.partial(jax.jit,
                   static_argnames=("stride", "eps", "compute_dtype", "n_tile"))
def basic_block_forward(x, params, stride=1, eps=1e-5,
                        compute_dtype=jnp.bfloat16, n_tile=None):
    """Pallas BasicBlock forward.  x: (N, Cin, H, W) NCHW -> (N, Cout, Ho, Wo)."""
    w1, g1, b1, w2, g2, b2 = params            # w1: (Cout, Cin, 3, 3) torch layout
    N, Cin, H, W = x.shape
    Cout = w1.shape[0]
    Ho = (H - 1) // stride + 1
    Wo = (W - 1) // stride + 1
    Po = Ho * Wo
    Pop = ((Po + 127) // 128) * 128            # 128-lane-aligned per-image column
    pad = _LANE_PAD
    cdt = jnp.dtype(compute_dtype)
    assert W + 1 <= pad and Wo + 1 <= pad
    if stride != 1:
        assert H % stride == 0 and W % stride == 0

    # conv1 input: flattened spatial; stride>1 subsampling hoisted into phases.
    if stride == 1:
        x_in = x.reshape(N, Cin, H * W)
        n_phase = 1
    else:
        n_phase = stride * stride
        x_in = jnp.concatenate(
            [x[:, :, rp::stride, cp::stride].reshape(N, Cin, Po)
             for rp in range(stride) for cp in range(stride)], axis=1)

    taps1, mask1 = _tap_plan(H, W, Ho, Wo, stride, cdt)
    taps2, mask2 = _tap_plan(Ho, Wo, Ho, Wo, 1, cdt)

    # torch (O, I, 3, 3) -> (O, 3, 3, I) -> (O, 9*I): matches the tap-stack order.
    w1k = jnp.transpose(w1, (0, 2, 3, 1)).reshape(Cout, 9 * Cin).astype(cdt)
    w2k = jnp.transpose(w2, (0, 2, 3, 1)).reshape(Cout, 9 * Cout).astype(cdt)

    if n_tile is None:
        n_tile = _pick_n_tile(N, _nbytes((n_phase * Cin, Po), x.dtype))
    assert N % n_tile == 0
    grid_n = N // n_tile

    # ---------------- kernel A: conv1 + batch stats ----------------
    vmem_a = _vmem_limit(
        _nbytes((n_tile, n_phase * Cin, Po), x.dtype),
        _nbytes((Cout, 9 * Cin), cdt), _nbytes((9, Po), cdt),
        _nbytes((n_tile, Cout, Po), cdt), _nbytes((1, Cout, 2), jnp.float32),
        _nbytes((n_phase * Cin, 2 * pad + Po), cdt),
        _nbytes((9 * Cin, n_tile * Pop), cdt),
        _nbytes((Cout, n_tile * Pop), jnp.float32))
    y1, stats1 = pl.pallas_call(
        functools.partial(_conv1_stats_kernel, n_tile=n_tile, c_in=Cin,
                          p_out=Po, pop=Pop, taps=taps1, pad=pad, cdt=cdt),
        grid=(grid_n,),
        in_specs=[
            pl.BlockSpec((n_tile, n_phase * Cin, Po), lambda i: (i, 0, 0)),
            pl.BlockSpec((Cout, 9 * Cin), lambda i: (0, 0)),
            pl.BlockSpec((9, Po), lambda i: (0, 0)),
        ],
        out_specs=(
            pl.BlockSpec((n_tile, Cout, Po), lambda i: (i, 0, 0)),
            pl.BlockSpec((1, Cout, 2), lambda i: (i, 0, 0)),
        ),
        out_shape=(
            jax.ShapeDtypeStruct((N, Cout, Po), cdt),
            jax.ShapeDtypeStruct((grid_n, Cout, 2), jnp.float32),
        ),
        scratch_shapes=[
            pltpu.VMEM((n_phase * Cin, 2 * pad + Po), cdt),
            pltpu.VMEM((9 * Cin, n_tile * Pop), cdt),
        ],
        compiler_params=pltpu.CompilerParams(
            dimension_semantics=("parallel",), vmem_limit_bytes=vmem_a),
    )(x_in, w1k, mask1)

    count = float(N * Ho * Wo)
    scale1, shift1 = _bn_scale_shift(stats1, g1, b1, count, eps)

    # ---------------- kernel B: bn1 + relu + conv2 + batch stats ----------------
    vmem_b = _vmem_limit(
        2 * _nbytes((n_tile, Cout, Po), cdt),
        2 * _nbytes((Cout, 1), jnp.float32),
        _nbytes((Cout, 9 * Cout), cdt), _nbytes((9, Po), cdt),
        _nbytes((1, Cout, 2), jnp.float32),
        _nbytes((Cout, 2 * pad + Po), cdt),
        _nbytes((9 * Cout, n_tile * Pop), cdt),
        _nbytes((Cout, n_tile * Pop), jnp.float32))
    y2, stats2 = pl.pallas_call(
        functools.partial(_bn_relu_conv2_stats_kernel, n_tile=n_tile, c_in=Cout,
                          p_out=Po, pop=Pop, taps=taps2, pad=pad, cdt=cdt),
        grid=(grid_n,),
        in_specs=[
            pl.BlockSpec((n_tile, Cout, Po), lambda i: (i, 0, 0)),
            pl.BlockSpec((Cout, 1), lambda i: (0, 0)),
            pl.BlockSpec((Cout, 1), lambda i: (0, 0)),
            pl.BlockSpec((Cout, 9 * Cout), lambda i: (0, 0)),
            pl.BlockSpec((9, Po), lambda i: (0, 0)),
        ],
        out_specs=(
            pl.BlockSpec((n_tile, Cout, Po), lambda i: (i, 0, 0)),
            pl.BlockSpec((1, Cout, 2), lambda i: (i, 0, 0)),
        ),
        out_shape=(
            jax.ShapeDtypeStruct((N, Cout, Po), cdt),
            jax.ShapeDtypeStruct((grid_n, Cout, 2), jnp.float32),
        ),
        scratch_shapes=[
            pltpu.VMEM((Cout, 2 * pad + Po), cdt),
            pltpu.VMEM((9 * Cout, n_tile * Pop), cdt),
        ],
        compiler_params=pltpu.CompilerParams(
            dimension_semantics=("parallel",), vmem_limit_bytes=vmem_b),
    )(y1, scale1, shift1, w2k, mask2)

    scale2, shift2 = _bn_scale_shift(stats2, g2, b2, count, eps)

    # ---------------- shortcut (folded into kernel C, no wrapper HBM pass) -------
    if stride == 1 and Cin == Cout:
        sc_src, c_sc, pad_c = x_in, Cin, 0      # identity: same layout, zero work
    else:
        # Option-A shortcut: phase (0,0) of x_in IS x[:, :, ::2, ::2]; the
        # channel zero-pad is applied in-kernel.
        assert stride == 2, "option-A shortcut assumes stride 2"
        pad_c = Cout // 4
        assert Cin + 2 * pad_c == Cout
        assert Cin % 8 == 0
        sc_src, c_sc = x_in, Cin                # BlockSpec slices channels [0:Cin]

    # ---------------- kernel C: bn2 + shortcut + relu ----------------
    vmem_c = _vmem_limit(
        _nbytes((n_tile, Cout, Po), cdt),
        _nbytes((n_tile, c_sc, Po), x.dtype),
        _nbytes((n_tile, Cout, Po), x.dtype),
        2 * _nbytes((Cout, 1), jnp.float32))
    out_flat = pl.pallas_call(
        functools.partial(_bn_add_relu_kernel, n_tile=n_tile, pad_c=pad_c),
        grid=(grid_n,),
        in_specs=[
            pl.BlockSpec((n_tile, Cout, Po), lambda i: (i, 0, 0)),
            pl.BlockSpec((Cout, 1), lambda i: (0, 0)),
            pl.BlockSpec((Cout, 1), lambda i: (0, 0)),
            pl.BlockSpec((n_tile, c_sc, Po), lambda i: (i, 0, 0)),
        ],
        out_specs=pl.BlockSpec((n_tile, Cout, Po), lambda i: (i, 0, 0)),
        out_shape=jax.ShapeDtypeStruct((N, Cout, Po), x.dtype),
        compiler_params=pltpu.CompilerParams(
            dimension_semantics=("parallel",), vmem_limit_bytes=vmem_c),
    )(y2, scale2, shift2, sc_src)

    return out_flat.reshape(N, Cout, Ho, Wo)


# ---------------------------------------------------------------------------
# Pure-JAX reference mirroring the PyTorch forward (training-mode BN)
# ---------------------------------------------------------------------------
def _reference(x, params, stride=1, eps=1e-5):
    w1, g1, b1, w2, g2, b2 = params

    def conv(v, w, s):
        return lax.conv_general_dilated(
            v, w, window_strides=(s, s), padding=((1, 1), (1, 1)),
            dimension_numbers=("NCHW", "OIHW", "NCHW"),
            precision=lax.Precision.HIGHEST)

    def bn(v, g, b):
        mean = jnp.mean(v, axis=(0, 2, 3), keepdims=True)
        var = jnp.mean((v - mean) ** 2, axis=(0, 2, 3), keepdims=True)
        return ((v - mean) * lax.rsqrt(var + eps) * g.reshape(1, -1, 1, 1)
                + b.reshape(1, -1, 1, 1))

    out = jax.nn.relu(bn(conv(x, w1, stride), g1, b1))
    out = bn(conv(out, w2, 1), g2, b2)
    if stride == 1 and x.shape[1] == w1.shape[0]:
        sc = x
    else:
        pad_c = w1.shape[0] // 4
        sc = jnp.pad(x[:, :, ::2, ::2], ((0, 0), (pad_c, pad_c), (0, 0), (0, 0)))
    return jax.nn.relu(out + sc)


if __name__ == "__main__":
    key = jax.random.PRNGKey(0)

    def make_params(k, cin, cout):
        k1, k2, k3, k4, k5, k6 = jax.random.split(k, 6)
        return (0.1 * jax.random.normal(k1, (cout, cin, 3, 3), jnp.float32),
                1.0 + 0.1 * jax.random.normal(k3, (cout,), jnp.float32),
                0.1 * jax.random.normal(k4, (cout,), jnp.float32),
                0.1 * jax.random.normal(k2, (cout, cout, 3, 3), jnp.float32),
                1.0 + 0.1 * jax.random.normal(k5, (cout,), jnp.float32),
                0.1 * jax.random.normal(k6, (cout,), jnp.float32))

    # ---- stride 1, identity shortcut ----
    kx, kp, krest = jax.random.split(key, 3)
    N, C, H, W = 2, 8, 16, 16
    x = jax.random.normal(kx, (N, C, H, W), jnp.float32)
    w1, g1, b1, w2, g2, b2 = make_params(kp, C, C)
    params = (w1, g1, b1, w2, g2, b2)
    ref = jax.block_until_ready(_reference(x, params, stride=1))

    out_f32 = jax.block_until_ready(
        basic_block_forward(x, params, stride=1, compute_dtype=jnp.float32))
    assert out_f32.shape == ref.shape, (out_f32.shape, ref.shape)
    err = float(jnp.max(jnp.abs(out_f32 - ref)))
    assert jnp.allclose(out_f32, ref, atol=1e-3, rtol=1e-3), err

    out_bf16 = jax.block_until_ready(
        basic_block_forward(x, params, stride=1,
                            compute_dtype=jnp.bfloat16, n_tile=2))
    err = float(jnp.max(jnp.abs(out_bf16 - ref)))
    assert jnp.allclose(out_bf16, ref, atol=7e-2, rtol=7e-2), err

    # ---- stride 2, option-A downsample shortcut (previously untested path) ----
    kx2, kp2 = jax.random.split(krest)
    Cin2, Cout2 = 16, 32
    x2 = jax.random.normal(kx2, (N, Cin2, H, W), jnp.float32)
    params2 = make_params(kp2, Cin2, Cout2)
    ref2 = jax.block_until_ready(_reference(x2, params2, stride=2))

    out2_f32 = jax.block_until_ready(
        basic_block_forward(x2, params2, stride=2, compute_dtype=jnp.float32))
    assert out2_f32.shape == ref2.shape, (out2_f32.shape, ref2.shape)
    err = float(jnp.max(jnp.abs(out2_f32 - ref2)))
    assert jnp.allclose(out2_f32, ref2, atol=1e-3, rtol=1e-3), err

    out2_bf16 = jax.block_until_ready(
        basic_block_forward(x2, params2, stride=2,
                            compute_dtype=jnp.bfloat16, n_tile=2))
    err = float(jnp.max(jnp.abs(out2_bf16 - ref2)))
    assert jnp.allclose(out2_bf16, ref2, atol=1.5e-1, rtol=1.5e-1), err

    print("KERNEL_OK")
</pallas_src>

<mosaic_0001>
module attributes {stable_mosaic.version = 11 : i64} {
  func.func @_conv1_stats_kernel(%arg0: i32, %arg1: memref<1x8x256xf32, #tpu.memory_space<vmem>>, %arg2: memref<8x72xf32, #tpu.memory_space<vmem>>, %arg3: memref<9x256xf32, #tpu.memory_space<vmem>>, %arg4: memref<1x8x256xf32, #tpu.memory_space<vmem>>, %arg5: memref<1x8x2xf32, #tpu.memory_space<vmem>>, %arg6: memref<8x512xf32, #tpu.memory_space<vmem>>, %arg7: memref<72x256xf32, #tpu.memory_space<vmem>>) attributes {dimension_semantics = [#tpu.dimension_semantics<parallel>], iteration_bounds = array<i64: 2>, scalar_prefetch = 0 : i64, scratch_operands = 2 : i64, tpu.core_type = #tpu.core_type<tc>, window_params = [{transform_indices = @transform_0, window_bounds = array<i64: 1, 8, 256>}, {pipeline_mode = #tpu.pipeline_mode<synchronous>, transform_indices = @transform_1, window_bounds = array<i64: 8, 72>}, {pipeline_mode = #tpu.pipeline_mode<synchronous>, transform_indices = @transform_2, window_bounds = array<i64: 9, 256>}, {transform_indices = @transform_3, window_bounds = array<i64: 1, 8, 256>}, {transform_indices = @transform_4, window_bounds = array<i64: 1, 8, 2>}]} {
    %cst = arith.constant 0.000000e+00 : f32
    %0 = vector.broadcast %cst : f32 to vector<8x128xf32>
    %c0 = arith.constant 0 : index
    %c0_0 = arith.constant 0 : index
    %1 = vector.load %arg6[%c0, %c0_0] : memref<8x512xf32, #tpu.memory_space<vmem>>, vector<8x128xf32>
    tpu.vector_store %arg6[%c0, %c0_0], %0 {strides = array<i32>} : memref<8x512xf32, #tpu.memory_space<vmem>>, vector<8x128xf32>,
    %c0_1 = arith.constant 0 : index
    %c384 = arith.constant 384 : index
    %2 = vector.load %arg6[%c0_1, %c384] : memref<8x512xf32, #tpu.memory_space<vmem>>, vector<8x128xf32>
    tpu.vector_store %arg6[%c0_1, %c384], %0 {strides = array<i32>} : memref<8x512xf32, #tpu.memory_space<vmem>>, vector<8x128xf32>,
    %c0_2 = arith.constant 0 : index
    %c0_3 = arith.constant 0 : index
    %c0_4 = arith.constant 0 : index
    %3 = vector.load %arg1[%c0_2, %c0_3, %c0_4] : memref<1x8x256xf32, #tpu.memory_space<vmem>>, vector<1x8x256xf32>
    %4 = vector.shape_cast %3 : vector<1x8x256xf32> to vector<8x256xf32>
    %c0_5 = arith.constant 0 : index
    %c128 = arith.constant 128 : index
    %5 = vector.load %arg6[%c0_5, %c128] : memref<8x512xf32, #tpu.memory_space<vmem>>, vector<8x256xf32>
    tpu.vector_store %arg6[%c0_5, %c128], %4 {strides = array<i32>} : memref<8x512xf32, #tpu.memory_space<vmem>>, vector<8x256xf32>,
    %c0_6 = arith.constant 0 : index
    %c111 = arith.constant 111 : index
    %6 = vector.load %arg6[%c0_6, %c111] : memref<8x512xf32, #tpu.memory_space<vmem>>, vector<8x256xf32>
    %c0_7 = arith.constant 0 : index
    %c0_8 = arith.constant 0 : index
    %7 = vector.load %arg3[%c0_7, %c0_8] : memref<9x256xf32, #tpu.memory_space<vmem>>, vector<1x256xf32>
    %8 = vector.broadcast %7 : vector<1x256xf32> to vector<8x256xf32>
    %9 = arith.mulf %6, %8 : vector<8x256xf32>
    %c0_9 = arith.constant 0 : index
    %c0_10 = arith.constant 0 : index
    %10 = vector.load %arg7[%c0_9, %c0_10] : memref<72x256xf32, #tpu.memory_space<vmem>>, vector<8x256xf32>
    tpu.vector_store %arg7[%c0_9, %c0_10], %9 {strides = array<i32>} : memref<72x256xf32, #tpu.memory_space<vmem>>, vector<8x256xf32>,
    %c0_11 = arith.constant 0 : index
    %c112 = arith.constant 112 : index
    %11 = vector.load %arg6[%c0_11, %c112] : memref<8x512xf32, #tpu.memory_space<vmem>>, vector<8x256xf32>
    %c8 = arith.constant 8 : index
    %c0_12 = arith.constant 0 : index
    %12 = vector.load %arg7[%c8, %c0_12] : memref<72x256xf32, #tpu.memory_space<vmem>>, vector<8x256xf32>
    tpu.vector_store %arg7[%c8, %c0_12], %11 {strides = array<i32>} : memref<72x256xf32, #tpu.memory_space<vmem>>, vector<8x256xf32>,
    %c0_13 = arith.constant 0 : index
    %c113 = arith.constant 113 : index
    %13 = vector.load %arg6[%c0_13, %c113] : memref<8x512xf32, #tpu.memory_space<vmem>>, vector<8x256xf32>
    %c2 = arith.constant 2 : index
    %c0_14 = arith.constant 0 : index
    %14 = vector.load %arg3[%c2, %c0_14] : memref<9x256xf32, #tpu.memory_space<vmem>>, vector<1x256xf32>
    %15 = vector.broadcast %14 : vector<1x256xf32> to vector<8x256xf32>
    %16 = arith.mulf %13, %15 : vector<8x256xf32>
    %c16 = arith.constant 16 : index
    %c0_15 = arith.constant 0 : index
    %17 = vector.load %arg7[%c16, %c0_15] : memref<72x256xf32, #tpu.memory_space<vmem>>, vector<8x256xf32>
    tpu.vector_store %arg7[%c16, %c0_15], %16 {strides = array<i32>} : memref<72x256xf32, #tpu.memory_space<vmem>>, vector<8x256xf32>,
    %c0_16 = arith.constant 0 : index
    %c127 = arith.constant 127 : index
    %18 = vector.load %arg6[%c0_16, %c127] : memref<8x512xf32, #tpu.memory_space<vmem>>, vector<8x256xf32>
    %c3 = arith.constant 3 : index
    %c0_17 = arith.constant 0 : index
    %19 = vector.load %arg3[%c3, %c0_17] : memref<9x256xf32, #tpu.memory_space<vmem>>, vector<1x256xf32>
    %20 = vector.broadcast %19 : vector<1x256xf32> to vector<8x256xf32>
    %21 = arith.mulf %18, %20 : vector<8x256xf32>
    %c24 = arith.constant 24 : index
    %c0_18 = arith.constant 0 : index
    %22 = vector.load %arg7[%c24, %c0_18] : memref<72x256xf32, #tpu.memory_space<vmem>>, vector<8x256xf32>
    tpu.vector_store %arg7[%c24, %c0_18], %21 {strides = array<i32>} : memref<72x256xf32, #tpu.memory_space<vmem>>, vector<8x256xf32>,
    %c0_19 = arith.constant 0 : index
    %c128_20 = arith.constant 128 : index
    %23 = vector.load %arg6[%c0_19, %c128_20] : memref<8x512xf32, #tpu.memory_space<vmem>>, vector<8x256xf32>
    %c32 = arith.constant 32 : index
    %c0_21 = arith.constant 0 : index
    %24 = vector.load %arg7[%c32, %c0_21] : memref<72x256xf32, #tpu.memory_space<vmem>>, vector<8x256xf32>
    tpu.vector_store %arg7[%c32, %c0_21], %23 {strides = array<i32>} : memref<72x256xf32, #tpu.memory_space<vmem>>, vector<8x256xf32>,
    %c0_22 = arith.constant 0 : index
    %c129 = arith.constant 129 : index
    %25 = vector.load %arg6[%c0_22, %c129] : memref<8x512xf32, #tpu.memory_space<vmem>>, vector<8x256xf32>
    %c5 = arith.constant 5 : index
    %c0_23 = arith.constant 0 : index
    %26 = vector.load %arg3[%c5, %c0_23] : memref<9x256xf32, #tpu.memory_space<vmem>>, vector<1x256xf32>
    %27 = vector.broadcast %26 : vector<1x256xf32> to vector<8x256xf32>
    %28 = arith.mulf %25, %27 : vector<8x256xf32>
    %c40 = arith.constant 40 : index
    %c0_24 = arith.constant 0 : index
    %29 = vector.load %arg7[%c40, %c0_24] : memref<72x256xf32, #tpu.memory_space<vmem>>, vector<8x256xf32>
    tpu.vector_store %arg7[%c40, %c0_24], %28 {strides = array<i32>} : memref<72x256xf32, #tpu.memory_space<vmem>>, vector<8x256xf32>,
    %c0_25 = arith.constant 0 : index
    %c143 = arith.constant 143 : index
    %30 = vector.load %arg6[%c0_25, %c143] : memref<8x512xf32, #tpu.memory_space<vmem>>, vector<8x256xf32>
    %c6 = arith.constant 6 : index
    %c0_26 = arith.constant 0 : index
    %31 = vector.load %arg3[%c6, %c0_26] : memref<9x256xf32, #tpu.memory_space<vmem>>, vector<1x256xf32>
    %32 = vector.broadcast %31 : vector<1x256xf32> to vector<8x256xf32>
    %33 = arith.mulf %30, %32 : vector<8x256xf32>
    %c48 = arith.constant 48 : index
    %c0_27 = arith.constant 0 : index
    %34 = vector.load %arg7[%c48, %c0_27] : memref<72x256xf32, #tpu.memory_space<vmem>>, vector<8x256xf32>
    tpu.vector_store %arg7[%c48, %c0_27], %33 {strides = array<i32>} : memref<72x256xf32, #tpu.memory_space<vmem>>, vector<8x256xf32>,
    %c0_28 = arith.constant 0 : index
    %c144 = arith.constant 144 : index
    %35 = vector.load %arg6[%c0_28, %c144] : memref<8x512xf32, #tpu.memory_space<vmem>>, vector<8x256xf32>
    %c56 = arith.constant 56 : index
    %c0_29 = arith.constant 0 : index
    %36 = vector.load %arg7[%c56, %c0_29] : memref<72x256xf32, #tpu.memory_space<vmem>>, vector<8x256xf32>
    tpu.vector_store %arg7[%c56, %c0_29], %35 {strides = array<i32>} : memref<72x256xf32, #tpu.memory_space<vmem>>, vector<8x256xf32>,
    %c0_30 = arith.constant 0 : index
    %c145 = arith.constant 145 : index
    %37 = vector.load %arg6[%c0_30, %c145] : memref<8x512xf32, #tpu.memory_space<vmem>>, vector<8x256xf32>
    %c8_31 = arith.constant 8 : index
    %c0_32 = arith.constant 0 : index
    %38 = vector.load %arg3[%c8_31, %c0_32] : memref<9x256xf32, #tpu.memory_space<vmem>>, vector<1x256xf32>
    %39 = vector.broadcast %38 : vector<1x256xf32> to vector<8x256xf32>
    %40 = arith.mulf %37, %39 : vector<8x256xf32>
    %c64 = arith.constant 64 : index
    %c0_33 = arith.constant 0 : index
    %41 = vector.load %arg7[%c64, %c0_33] : memref<72x256xf32, #tpu.memory_space<vmem>>, vector<8x256xf32>
    tpu.vector_store %arg7[%c64, %c0_33], %40 {strides = array<i32>} : memref<72x256xf32, #tpu.memory_space<vmem>>, vector<8x256xf32>,
    %c0_34 = arith.constant 0 : index
    %c0_35 = arith.constant 0 : index
    %42 = vector.load %arg2[%c0_34, %c0_35] : memref<8x72xf32, #tpu.memory_space<vmem>>, vector<8x72xf32>
    %c0_36 = arith.constant 0 : index
    %c0_37 = arith.constant 0 : index
    %43 = vector.load %arg7[%c0_36, %c0_37] : memref<72x256xf32, #tpu.memory_space<vmem>>, vector<72x256xf32>
    %cst_38 = arith.constant dense<0.000000e+00> : vector<8x256xf32>
    %44 = tpu.matmul %42, %43, %cst_38 {dimension_numbers = #tpu.dot_dimension_numbers<[1], [0], [0], [1], [0, 0, 1, 1], [], []>} : vector<8x72xf32>, vector<72x256xf32>, vector<8x256xf32> -> vector<8x256xf32>
    %cst_39 = arith.constant dense<0.000000e+00> : vector<8xf32>
    %45 = vector.multi_reduction <add>, %44, %cst_39 [1] : vector<8x256xf32> to vector<8xf32>
    %46 = vector.shape_cast %45 : vector<8xf32> to vector<8x1xf32>
    %c0_40 = arith.constant 0 : index
    %c0_41 = arith.constant 0 : index
    %c0_42 = arith.constant 0 : index
    %47 = vector.load %arg5[%c0_40, %c0_41, %c0_42] : memref<1x8x2xf32, #tpu.memory_space<vmem>>, vector<1x8x1xf32>
    %48 = vector.shape_cast %47 : vector<1x8x1xf32> to vector<8x1xf32>
    %49 = vector.shape_cast %46 : vector<8x1xf32> to vector<1x8x1xf32>
    tpu.vector_store %arg5[%c0_40, %c0_41, %c0_42], %49 {strides = array<i32>} : memref<1x8x2xf32, #tpu.memory_space<vmem>>, vector<1x8x1xf32>,
    %50 = arith.mulf %44, %44 : vector<8x256xf32>
    %cst_43 = arith.constant dense<0.000000e+00> : vector<8xf32>
    %51 = vector.multi_reduction <add>, %50, %cst_43 [1] : vector<8x256xf32> to vector<8xf32>
    %52 = vector.shape_cast %51 : vector<8xf32> to vector<8x1xf32>
    %c0_44 = arith.constant 0 : index
    %c0_45 = arith.constant 0 : index
    %c1 = arith.constant 1 : index
    %53 = vector.load %arg5[%c0_44, %c0_45, %c1] : memref<1x8x2xf32, #tpu.memory_space<vmem>>, vector<1x8x1xf32>
    %54 = vector.shape_cast %53 : vector<1x8x1xf32> to vector<8x1xf32>
    %55 = vector.shape_cast %52 : vector<8x1xf32> to vector<1x8x1xf32>
    tpu.vector_store %arg5[%c0_44, %c0_45, %c1], %55 {strides = array<i32>} : memref<1x8x2xf32, #tpu.memory_space<vmem>>, vector<1x8x1xf32>,
    %c0_46 = arith.constant 0 : index
    %c0_47 = arith.constant 0 : index
    %c0_48 = arith.constant 0 : index
    %56 = vector.load %arg4[%c0_46, %c0_47, %c0_48] : memref<1x8x256xf32, #tpu.memory_space<vmem>>, vector<1x8x256xf32>
    %57 = vector.shape_cast %56 : vector<1x8x256xf32> to vector<8x256xf32>
    %58 = vector.shape_cast %44 : vector<8x256xf32> to vector<1x8x256xf32>
    tpu.vector_store %arg4[%c0_46, %c0_47, %c0_48], %58 {strides = array<i32>} : memref<1x8x256xf32, #tpu.memory_space<vmem>>, vector<1x8x256xf32>,
    return
  }
  func.func @transform_0(%arg0: i32) -> (i32, i32, i32) {
    %c0_i32 = arith.constant 0 : i32
    %c0_i32_0 = arith.constant 0 : i32
    %c0_i32_1 = arith.constant 0 : i32
    return %arg0, %c0_i32, %c0_i32_0 : i32, i32, i32
  }
  func.func @transform_1(%arg0: i32) -> (i32, i32) {
    %c0_i32 = arith.constant 0 : i32
    %c0_i32_0 = arith.constant 0 : i32
    %c0_i32_1 = arith.constant 0 : i32
    return %c0_i32, %c0_i32_0 : i32, i32
  }
  func.func @transform_2(%arg0: i32) -> (i32, i32) {
    %c0_i32 = arith.constant 0 : i32
    %c0_i32_0 = arith.constant 0 : i32
    %c0_i32_1 = arith.constant 0 : i32
    return %c0_i32, %c0_i32_0 : i32, i32
  }
  func.func @transform_3(%arg0: i32) -> (i32, i32, i32) {
    %c0_i32 = arith.constant 0 : i32
    %c0_i32_0 = arith.constant 0 : i32
    %c0_i32_1 = arith.constant 0 : i32
    return %arg0, %c0_i32, %c0_i32_0 : i32, i32, i32
  }
  func.func @transform_4(%arg0: i32) -> (i32, i32, i32) {
    %c0_i32 = arith.constant 0 : i32
    %c0_i32_0 = arith.constant 0 : i32
    %c0_i32_1 = arith.constant 0 : i32
    return %arg0, %c0_i32, %c0_i32_0 : i32, i32, i32
  }
}

module attributes {stable_mosaic.version = 11 : i64} {
  func.func @_bn_relu_conv2_stats_kernel(%arg0: i32, %arg1: memref<1x8x256xf32, #tpu.memory_space<vmem>>, %arg2: memref<8x1xf32, #tpu.memory_space<vmem>>, %arg3: memref<8x1xf32, #tpu.memory_space<vmem>>, %arg4: memref<8x72xf32, #tpu.memory_space<vmem>>, %arg5: memref<9x256xf32, #tpu.memory_space<vmem>>, %arg6: memref<1x8x256xf32, #tpu.memory_space<vmem>>, %arg7: memref<1x8x2xf32, #tpu.memory_space<vmem>>, %arg8: memref<8x512xf32, #tpu.memory_space<vmem>>, %arg9: memref<72x256xf32, #tpu.memory_space<vmem>>) attributes {dimension_semantics = [#tpu.dimension_semantics<parallel>], iteration_bounds = array<i64: 2>, scalar_prefetch = 0 : i64, scratch_operands = 2 : i64, tpu.core_type = #tpu.core_type<tc>, window_params = [{transform_indices = @transform_0, window_bounds = array<i64: 1, 8, 256>}, {pipeline_mode = #tpu.pipeline_mode<synchronous>, transform_indices = @transform_1, window_bounds = array<i64: 8, 1>}, {pipeline_mode = #tpu.pipeline_mode<synchronous>, transform_indices = @transform_2, window_bounds = array<i64: 8, 1>}, {pipeline_mode = #tpu.pipeline_mode<synchronous>, transform_indices = @transform_3, window_bounds = array<i64: 8, 72>}, {pipeline_mode = #tpu.pipeline_mode<synchronous>, transform_indices = @transform_4, window_bounds = array<i64: 9, 256>}, {transform_indices = @transform_5, window_bounds = array<i64: 1, 8, 256>}, {transform_indices = @transform_6, window_bounds = array<i64: 1, 8, 2>}]} {
    %cst = arith.constant 0.000000e+00 : f32
    %0 = vector.broadcast %cst : f32 to vector<8x128xf32>
    %c0 = arith.constant 0 : index
    %c0_0 = arith.constant 0 : index
    %1 = vector.load %arg8[%c0, %c0_0] : memref<8x512xf32, #tpu.memory_space<vmem>>, vector<8x128xf32>
    tpu.vector_store %arg8[%c0, %c0_0], %0 {strides = array<i32>} : memref<8x512xf32, #tpu.memory_space<vmem>>, vector<8x128xf32>,
    %c0_1 = arith.constant 0 : index
    %c384 = arith.constant 384 : index
    %2 = vector.load %arg8[%c0_1, %c384] : memref<8x512xf32, #tpu.memory_space<vmem>>, vector<8x128xf32>
    tpu.vector_store %arg8[%c0_1, %c384], %0 {strides = array<i32>} : memref<8x512xf32, #tpu.memory_space<vmem>>, vector<8x128xf32>,
    %c0_2 = arith.constant 0 : index
    %c0_3 = arith.constant 0 : index
    %c0_4 = arith.constant 0 : index
    %3 = vector.load %arg1[%c0_2, %c0_3, %c0_4] : memref<1x8x256xf32, #tpu.memory_space<vmem>>, vector<1x8x256xf32>
    %4 = vector.shape_cast %3 : vector<1x8x256xf32> to vector<8x256xf32>
    %c0_5 = arith.constant 0 : index
    %c0_6 = arith.constant 0 : index
    %5 = vector.load %arg2[%c0_5, %c0_6] : memref<8x1xf32, #tpu.memory_space<vmem>>, vector<8x1xf32>
    %6 = vector.broadcast %5 : vector<8x1xf32> to vector<8x256xf32>
    %7 = arith.mulf %4, %6 : vector<8x256xf32>
    %c0_7 = arith.constant 0 : index
    %c0_8 = arith.constant 0 : index
    %8 = vector.load %arg3[%c0_7, %c0_8] : memref<8x1xf32, #tpu.memory_space<vmem>>, vector<8x1xf32>
    %9 = vector.broadcast %8 : vector<8x1xf32> to vector<8x256xf32>
    %10 = arith.addf %7, %9 : vector<8x256xf32>
    %cst_9 = arith.constant 0.000000e+00 : f32
    %11 = vector.broadcast %cst_9 : f32 to vector<8x256xf32>
    %12 = arith.maximumf %10, %11 : vector<8x256xf32>
    %c0_10 = arith.constant 0 : index
    %c128 = arith.constant 128 : index
    %13 = vector.load %arg8[%c0_10, %c128] : memref<8x512xf32, #tpu.memory_space<vmem>>, vector<8x256xf32>
    tpu.vector_store %arg8[%c0_10, %c128], %12 {strides = array<i32>} : memref<8x512xf32, #tpu.memory_space<vmem>>, vector<8x256xf32>,
    %c0_11 = arith.constant 0 : index
    %c111 = arith.constant 111 : index
    %14 = vector.load %arg8[%c0_11, %c111] : memref<8x512xf32, #tpu.memory_space<vmem>>, vector<8x256xf32>
    %c0_12 = arith.constant 0 : index
    %c0_13 = arith.constant 0 : index
    %15 = vector.load %arg5[%c0_12, %c0_13] : memref<9x256xf32, #tpu.memory_space<vmem>>, vector<1x256xf32>
    %16 = vector.broadcast %15 : vector<1x256xf32> to vector<8x256xf32>
    %17 = arith.mulf %14, %16 : vector<8x256xf32>
    %c0_14 = arith.constant 0 : index
    %c0_15 = arith.constant 0 : index
    %18 = vector.load %arg9[%c0_14, %c0_15] : memref<72x256xf32, #tpu.memory_space<vmem>>, vector<8x256xf32>
    tpu.vector_store %arg9[%c0_14, %c0_15], %17 {strides = array<i32>} : memref<72x256xf32, #tpu.memory_space<vmem>>, vector<8x256xf32>,
    %c0_16 = arith.constant 0 : index
    %c112 = arith.constant 112 : index
    %19 = vector.load %arg8[%c0_16, %c112] : memref<8x512xf32, #tpu.memory_space<vmem>>, vector<8x256xf32>
    %c8 = arith.constant 8 : index
    %c0_17 = arith.constant 0 : index
    %20 = vector.load %arg9[%c8, %c0_17] : memref<72x256xf32, #tpu.memory_space<vmem>>, vector<8x256xf32>
    tpu.vector_store %arg9[%c8, %c0_17], %19 {strides = array<i32>} : memref<72x256xf32, #tpu.memory_space<vmem>>, vector<8x256xf32>,
    %c0_18 = arith.constant 0 : index
    %c113 = arith.constant 113 : index
    %21 = vector.load %arg8[%c0_18, %c113] : memref<8x512xf32, #tpu.memory_space<vmem>>, vector<8x256xf32>
    %c2 = arith.constant 2 : index
    %c0_19 = arith.constant 0 : index
    %22 = vector.load %arg5[%c2, %c0_19] : memref<9x256xf32, #tpu.memory_space<vmem>>, vector<1x256xf32>
    %23 = vector.broadcast %22 : vector<1x256xf32> to vector<8x256xf32>
    %24 = arith.mulf %21, %23 : vector<8x256xf32>
    %c16 = arith.constant 16 : index
    %c0_20 = arith.constant 0 : index
    %25 = vector.load %arg9[%c16, %c0_20] : memref<72x256xf32, #tpu.memory_space<vmem>>, vector<8x256xf32>
    tpu.vector_store %arg9[%c16, %c0_20], %24 {strides = array<i32>} : memref<72x256xf32, #tpu.memory_space<vmem>>, vector<8x256xf32>,
    %c0_21 = arith.constant 0 : index
    %c127 = arith.constant 127 : index
    %26 = vector.load %arg8[%c0_21, %c127] : memref<8x512xf32, #tpu.memory_space<vmem>>, vector<8x256xf32>
    %c3 = arith.constant 3 : index
    %c0_22 = arith.constant 0 : index
    %27 = vector.load %arg5[%c3, %c0_22] : memref<9x256xf32, #tpu.memory_space<vmem>>, vector<1x256xf32>
    %28 = vector.broadcast %27 : vector<1x256xf32> to vector<8x256xf32>
    %29 = arith.mulf %26, %28 : vector<8x256xf32>
    %c24 = arith.constant 24 : index
    %c0_23 = arith.constant 0 : index
    %30 = vector.load %arg9[%c24, %c0_23] : memref<72x256xf32, #tpu.memory_space<vmem>>, vector<8x256xf32>
    tpu.vector_store %arg9[%c24, %c0_23], %29 {strides = array<i32>} : memref<72x256xf32, #tpu.memory_space<vmem>>, vector<8x256xf32>,
    %c0_24 = arith.constant 0 : index
    %c128_25 = arith.constant 128 : index
    %31 = vector.load %arg8[%c0_24, %c128_25] : memref<8x512xf32, #tpu.memory_space<vmem>>, vector<8x256xf32>
    %c32 = arith.constant 32 : index
    %c0_26 = arith.constant 0 : index
    %32 = vector.load %arg9[%c32, %c0_26] : memref<72x256xf32, #tpu.memory_space<vmem>>, vector<8x256xf32>
    tpu.vector_store %arg9[%c32, %c0_26], %31 {strides = array<i32>} : memref<72x256xf32, #tpu.memory_space<vmem>>, vector<8x256xf32>,
    %c0_27 = arith.constant 0 : index
    %c129 = arith.constant 129 : index
    %33 = vector.load %arg8[%c0_27, %c129] : memref<8x512xf32, #tpu.memory_space<vmem>>, vector<8x256xf32>
    %c5 = arith.constant 5 : index
    %c0_28 = arith.constant 0 : index
    %34 = vector.load %arg5[%c5, %c0_28] : memref<9x256xf32, #tpu.memory_space<vmem>>, vector<1x256xf32>
    %35 = vector.broadcast %34 : vector<1x256xf32> to vector<8x256xf32>
    %36 = arith.mulf %33, %35 : vector<8x256xf32>
    %c40 = arith.constant 40 : index
    %c0_29 = arith.constant 0 : index
    %37 = vector.load %arg9[%c40, %c0_29] : memref<72x256xf32, #tpu.memory_space<vmem>>, vector<8x256xf32>
    tpu.vector_store %arg9[%c40, %c0_29], %36 {strides = array<i32>} : memref<72x256xf32, #tpu.memory_space<vmem>>, vector<8x256xf32>,
    %c0_30 = arith.constant 0 : index
    %c143 = arith.constant 143 : index
    %38 = vector.load %arg8[%c0_30, %c143] : memref<8x512xf32, #tpu.memory_space<vmem>>, vector<8x256xf32>
    %c6 = arith.constant 6 : index
    %c0_31 = arith.constant 0 : index
    %39 = vector.load %arg5[%c6, %c0_31] : memref<9x256xf32, #tpu.memory_space<vmem>>, vector<1x256xf32>
    %40 = vector.broadcast %39 : vector<1x256xf32> to vector<8x256xf32>
    %41 = arith.mulf %38, %40 : vector<8x256xf32>
    %c48 = arith.constant 48 : index
    %c0_32 = arith.constant 0 : index
    %42 = vector.load %arg9[%c48, %c0_32] : memref<72x256xf32, #tpu.memory_space<vmem>>, vector<8x256xf32>
    tpu.vector_store %arg9[%c48, %c0_32], %41 {strides = array<i32>} : memref<72x256xf32, #tpu.memory_space<vmem>>, vector<8x256xf32>,
    %c0_33 = arith.constant 0 : index
    %c144 = arith.constant 144 : index
    %43 = vector.load %arg8[%c0_33, %c144] : memref<8x512xf32, #tpu.memory_space<vmem>>, vector<8x256xf32>
    %c56 = arith.constant 56 : index
    %c0_34 = arith.constant 0 : index
    %44 = vector.load %arg9[%c56, %c0_34] : memref<72x256xf32, #tpu.memory_space<vmem>>, vector<8x256xf32>
    tpu.vector_store %arg9[%c56, %c0_34], %43 {strides = array<i32>} : memref<72x256xf32, #tpu.memory_space<vmem>>, vector<8x256xf32>,
    %c0_35 = arith.constant 0 : index
    %c145 = arith.constant 145 : index
    %45 = vector.load %arg8[%c0_35, %c145] : memref<8x512xf32, #tpu.memory_space<vmem>>, vector<8x256xf32>
    %c8_36 = arith.constant 8 : index
    %c0_37 = arith.constant 0 : index
    %46 = vector.load %arg5[%c8_36, %c0_37] : memref<9x256xf32, #tpu.memory_space<vmem>>, vector<1x256xf32>
    %47 = vector.broadcast %46 : vector<1x256xf32> to vector<8x256xf32>
    %48 = arith.mulf %45, %47 : vector<8x256xf32>
    %c64 = arith.constant 64 : index
    %c0_38 = arith.constant 0 : index
    %49 = vector.load %arg9[%c64, %c0_38] : memref<72x256xf32, #tpu.memory_space<vmem>>, vector<8x256xf32>
    tpu.vector_store %arg9[%c64, %c0_38], %48 {strides = array<i32>} : memref<72x256xf32, #tpu.memory_space<vmem>>, vector<8x256xf32>,
    %c0_39 = arith.constant 0 : index
    %c0_40 = arith.constant 0 : index
    %50 = vector.load %arg4[%c0_39, %c0_40] : memref<8x72xf32, #tpu.memory_space<vmem>>, vector<8x72xf32>
    %c0_41 = arith.constant 0 : index
    %c0_42 = arith.constant 0 : index
    %51 = vector.load %arg9[%c0_41, %c0_42] : memref<72x256xf32, #tpu.memory_space<vmem>>, vector<72x256xf32>
    %cst_43 = arith.constant dense<0.000000e+00> : vector<8x256xf32>
    %52 = tpu.matmul %50, %51, %cst_43 {dimension_numbers = #tpu.dot_dimension_numbers<[1], [0], [0], [1], [0, 0, 1, 1], [], []>} : vector<8x72xf32>, vector<72x256xf32>, vector<8x256xf32> -> vector<8x256xf32>
    %cst_44 = arith.constant dense<0.000000e+00> : vector<8xf32>
    %53 = vector.multi_reduction <add>, %52, %cst_44 [1] : vector<8x256xf32> to vector<8xf32>
    %54 = vector.shape_cast %53 : vector<8xf32> to vector<8x1xf32>
    %c0_45 = arith.constant 0 : index
    %c0_46 = arith.constant 0 : index
    %c0_47 = arith.constant 0 : index
    %55 = vector.load %arg7[%c0_45, %c0_46, %c0_47] : memref<1x8x2xf32, #tpu.memory_space<vmem>>, vector<1x8x1xf32>
    %56 = vector.shape_cast %55 : vector<1x8x1xf32> to vector<8x1xf32>
    %57 = vector.shape_cast %54 : vector<8x1xf32> to vector<1x8x1xf32>
    tpu.vector_store %arg7[%c0_45, %c0_46, %c0_47], %57 {strides = array<i32>} : memref<1x8x2xf32, #tpu.memory_space<vmem>>, vector<1x8x1xf32>,
    %58 = arith.mulf %52, %52 : vector<8x256xf32>
    %cst_48 = arith.constant dense<0.000000e+00> : vector<8xf32>
    %59 = vector.multi_reduction <add>, %58, %cst_48 [1] : vector<8x256xf32> to vector<8xf32>
    %60 = vector.shape_cast %59 : vector<8xf32> to vector<8x1xf32>
    %c0_49 = arith.constant 0 : index
    %c0_50 = arith.constant 0 : index
    %c1 = arith.constant 1 : index
    %61 = vector.load %arg7[%c0_49, %c0_50, %c1] : memref<1x8x2xf32, #tpu.memory_space<vmem>>, vector<1x8x1xf32>
    %62 = vector.shape_cast %61 : vector<1x8x1xf32> to vector<8x1xf32>
    %63 = vector.shape_cast %60 : vector<8x1xf32> to vector<1x8x1xf32>
    tpu.vector_store %arg7[%c0_49, %c0_50, %c1], %63 {strides = array<i32>} : memref<1x8x2xf32, #tpu.memory_space<vmem>>, vector<1x8x1xf32>,
    %c0_51 = arith.constant 0 : index
    %c0_52 = arith.constant 0 : index
    %c0_53 = arith.constant 0 : index
    %64 = vector.load %arg6[%c0_51, %c0_52, %c0_53] : memref<1x8x256xf32, #tpu.memory_space<vmem>>, vector<1x8x256xf32>
    %65 = vector.shape_cast %64 : vector<1x8x256xf32> to vector<8x256xf32>
    %66 = vector.shape_cast %52 : vector<8x256xf32> to vector<1x8x256xf32>
    tpu.vector_store %arg6[%c0_51, %c0_52, %c0_53], %66 {strides = array<i32>} : memref<1x8x256xf32, #tpu.memory_space<vmem>>, vector<1x8x256xf32>,
    return
  }
  func.func @transform_0(%arg0: i32) -> (i32, i32, i32) {
    %c0_i32 = arith.constant 0 : i32
    %c0_i32_0 = arith.constant 0 : i32
    %c0_i32_1 = arith.constant 0 : i32
    return %arg0, %c0_i32, %c0_i32_0 : i32, i32, i32
  }
  func.func @transform_1(%arg0: i32) -> (i32, i32) {
    %c0_i32 = arith.constant 0 : i32
    %c0_i32_0 = arith.constant 0 : i32
    %c0_i32_1 = arith.constant 0 : i32
    return %c0_i32, %c0_i32_0 : i32, i32
  }
  func.func @transform_2(%arg0: i32) -> (i32, i32) {
    %c0_i32 = arith.constant 0 : i32
    %c0_i32_0 = arith.constant 0 : i32
    %c0_i32_1 = arith.constant 0 : i32
    return %c0_i32, %c0_i32_0 : i32, i32
  }
  func.func @transform_3(%arg0: i32) -> (i32, i32) {
    %c0_i32 = arith.constant 0 : i32
    %c0_i32_0 = arith.constant 0 : i32
    %c0_i32_1 = arith.constant 0 : i32
    return %c0_i32, %c0_i32_0 : i32, i32
  }
  func.func @transform_4(%arg0: i32) -> (i32, i32) {
    %c0_i32 = arith.constant 0 : i32
    %c0_i32_0 = arith.constant 0 : i32
    %c0_i32_1 = arith.constant 0 : i32
    return %c0_i32, %c0_i32_0 : i32, i32
  }
  func.func @transform_5(%arg0: i32) -> (i32, i32, i32) {
    %c0_i32 = arith.constant 0 : i32
    %c0_i32_0 = arith.constant 0 : i32
    %c0_i32_1 = arith.constant 0 : i32
    return %arg0, %c0_i32, %c0_i32_0 : i32, i32, i32
  }
  func.func @transform_6(%arg0: i32) -> (i32, i32, i32) {
    %c0_i32 = arith.constant 0 : i32
    %c0_i32_0 = arith.constant 0 : i32
    %c0_i32_1 = arith.constant 0 : i32
    return %arg0, %c0_i32, %c0_i32_0 : i32, i32, i32
  }
}

module attributes {stable_mosaic.version = 11 : i64} {
  func.func @_bn_add_relu_kernel(%arg0: i32, %arg1: memref<1x8x256xf32, #tpu.memory_space<vmem>>, %arg2: memref<8x1xf32, #tpu.memory_space<vmem>>, %arg3: memref<8x1xf32, #tpu.memory_space<vmem>>, %arg4: memref<1x8x256xf32, #tpu.memory_space<vmem>>, %arg5: memref<1x8x256xf32, #tpu.memory_space<vmem>>) attributes {dimension_semantics = [#tpu.dimension_semantics<parallel>], iteration_bounds = array<i64: 2>, scalar_prefetch = 0 : i64, scratch_operands = 0 : i64, tpu.core_type = #tpu.core_type<tc>, window_params = [{transform_indices = @transform_0, window_bounds = array<i64: 1, 8, 256>}, {pipeline_mode = #tpu.pipeline_mode<synchronous>, transform_indices = @transform_1, window_bounds = array<i64: 8, 1>}, {pipeline_mode = #tpu.pipeline_mode<synchronous>, transform_indices = @transform_2, window_bounds = array<i64: 8, 1>}, {transform_indices = @transform_3, window_bounds = array<i64: 1, 8, 256>}, {transform_indices = @transform_4, window_bounds = array<i64: 1, 8, 256>}]} {
    %c0 = arith.constant 0 : index
    %c0_0 = arith.constant 0 : index
    %0 = vector.load %arg2[%c0, %c0_0] : memref<8x1xf32, #tpu.memory_space<vmem>>, vector<8x1xf32>
    %c0_1 = arith.constant 0 : index
    %c0_2 = arith.constant 0 : index
    %1 = vector.load %arg3[%c0_1, %c0_2] : memref<8x1xf32, #tpu.memory_space<vmem>>, vector<8x1xf32>
    %c0_3 = arith.constant 0 : index
    %c0_4 = arith.constant 0 : index
    %c0_5 = arith.constant 0 : index
    %2 = vector.load %arg1[%c0_3, %c0_4, %c0_5] : memref<1x8x256xf32, #tpu.memory_space<vmem>>, vector<1x8x256xf32>
    %3 = vector.shape_cast %2 : vector<1x8x256xf32> to vector<8x256xf32>
    %4 = vector.broadcast %0 : vector<8x1xf32> to vector<8x256xf32>
    %5 = arith.mulf %3, %4 : vector<8x256xf32>
    %6 = vector.broadcast %1 : vector<8x1xf32> to vector<8x256xf32>
    %7 = arith.addf %5, %6 : vector<8x256xf32>
    %c0_6 = arith.constant 0 : index
    %c0_7 = arith.constant 0 : index
    %c0_8 = arith.constant 0 : index
    %8 = vector.load %arg4[%c0_6, %c0_7, %c0_8] : memref<1x8x256xf32, #tpu.memory_space<vmem>>, vector<1x8x256xf32>
    %9 = vector.shape_cast %8 : vector<1x8x256xf32> to vector<8x256xf32>
    %10 = arith.addf %7, %9 : vector<8x256xf32>
    %cst = arith.constant 0.000000e+00 : f32
    %11 = vector.broadcast %cst : f32 to vector<8x256xf32>
    %12 = arith.maximumf %10, %11 : vector<8x256xf32>
    %c0_9 = arith.constant 0 : index
    %c0_10 = arith.constant 0 : index
    %c0_11 = arith.constant 0 : index
    %13 = vector.load %arg5[%c0_9, %c0_10, %c0_11] : memref<1x8x256xf32, #tpu.memory_space<vmem>>, vector<1x8x256xf32>
    %14 = vector.shape_cast %13 : vector<1x8x256xf32> to vector<8x256xf32>
    %15 = vector.shape_cast %12 : vector<8x256xf32> to vector<1x8x256xf32>
    tpu.vector_store %arg5[%c0_9, %c0_10, %c0_11], %15 {strides = array<i32>} : memref<1x8x256xf32, #tpu.memory_space<vmem>>, vector<1x8x256xf32>,
    return
  }
  func.func @transform_0(%arg0: i32) -> (i32, i32, i32) {
    %c0_i32 = arith.constant 0 : i32
    %c0_i32_0 = arith.constant 0 : i32
    %c0_i32_1 = arith.constant 0 : i32
    return %arg0, %c0_i32, %c0_i32_0 : i32, i32, i32
  }
  func.func @transform_1(%arg0: i32) -> (i32, i32) {
    %c0_i32 = arith.constant 0 : i32
    %c0_i32_0 = arith.constant 0 : i32
    %c0_i32_1 = arith.constant 0 : i32
    return %c0_i32, %c0_i32_0 : i32, i32
  }
  func.func @transform_2(%arg0: i32) -> (i32, i32) {
    %c0_i32 = arith.constant 0 : i32
    %c0_i32_0 = arith.constant 0 : i32
    %c0_i32_1 = arith.constant 0 : i32
    return %c0_i32, %c0_i32_0 : i32, i32
  }
  func.func @transform_3(%arg0: i32) -> (i32, i32, i32) {
    %c0_i32 = arith.constant 0 : i32
    %c0_i32_0 = arith.constant 0 : i32
    %c0_i32_1 = arith.constant 0 : i32
    return %arg0, %c0_i32, %c0_i32_0 : i32, i32, i32
  }
  func.func @transform_4(%arg0: i32) -> (i32, i32, i32) {
    %c0_i32 = arith.constant 0 : i32
    %c0_i32_0 = arith.constant 0 : i32
    %c0_i32_1 = arith.constant 0 : i32
    return %arg0, %c0_i32, %c0_i32_0 : i32, i32, i32
  }
}

</mosaic_0001>

<bundles_post_ra>
// kernel: basic_block_forward.5
= control target key start
LH: loop header
LB: loop body
LE: loop exit
PB: predicated region body
PF: predicated region fallthrough
CT: control target
= control target key end

     0   :  { %s371_s15 = smov 0   ;;  %s397_s0 = inlined_call_operand.vmem [shape: f32[2,8,256], index: 0, kind: input, shape index: {}]   ;;  %s398_s1 = inlined_call_operand.vmem [shape: f32[8,1], index: 1, kind: input, shape index: {}]   ;;  %s399_s2 = inlined_call_operand.vmem [shape: f32[8,1], index: 2, kind: input, shape index: {}]   ;;  %s400_s3 = inlined_call_operand.vmem [shape: f32[2,8,256], index: 3, kind: input, shape index: {}]   ;;  %s401_s4 = inlined_call_operand.vmem [shape: f32[2,8,256], index: 4, kind: output, shape index: {}]  }
   0x1 LB: > { %s311_s16 = sadd.s32 4294967295, %s343_s15   ;;  %p315_p0 = scmp.ge.s32.totalorder %s343_s15, 1  ;;  %s343_s15 = sphi %s371_s15, %s14_s15  }
   0x2   : > { %p172_p1 = scmp.lt.s32.totalorder %s343_s15, 3 }
   0x4   : > { %p173_p2 = pnand %p315_p0, %p172_p1 }
   0x5   : > { %p203_p3 = scmp.lt.s32.totalorder (!%p173_p2), %s311_s16, 1 }
   0x6   : > { %176 = sbr.rel (%p173_p2) target bundleno = 144 (0x90), region = 36 }
   0xb   : > { %v218_v0 = vld [vmem:[%s398_s1] sm:$0xff]  ;;  %v345_v1 = vmov 0   ;;  %s403_s16 = smov (!%p203_p3, %s311_s16), 1 }
   0xc   : > { %336 = vset.pattern.permute.xlu0 %v345_v1  ;;  %v219_v2 = vld [vmem:[%s399_s2] sm:$0xff]  ;;  %s324_s21 = sshll.u32 %s403_s16, 4 }
   0xd   : > { %224 = vperm.xlu0 %336, %v218_v0   ;;  %s207_s24 = scalar_lea.vmem %s397_s0, %s324_s21  ;;  %s212_s27 = scalar_lea.vmem %s400_s3, %s324_s21 }
   0xe   : > { %v220_v4 = vld [vmem:[%s207_s24] sm:$0xff]  ;;  %v221_v5 = vld [vmem:[%s207_s24 + $0x8] sm:$0xff]  ;;  %s217_s30 = scalar_lea.vmem %s401_s4, %s324_s21 }
   0xf   : > { %v236_v9 = vld [vmem:[%s212_s27] sm:$0xff]  ;;  %v237_v10 = vld [vmem:[%s212_s27 + $0x8] sm:$0xff] }
  0x15   : > { %231 = vperm.xlu0 %336, %v219_v2  }
  0x7f   : > { %v225_v3 = vpop.permute.xlu0 %224 }
  0x80   : > { %v227_v6 = vmul.f32 %v225_v3, %v220_v4  ;;  %v228_v7 = vmul.f32 %v225_v3, %v221_v5 }
  0x87   : > { %v232_v8 = vpop.permute.xlu0 %231 }
  0x88   : > { %v234_v11 = vadd.f32 %v232_v8, %v227_v6  ;;  %v235_v12 = vadd.f32 %v232_v8, %v228_v7 }
  0x8a   : > { %v238_v13 = vadd.f32 %v236_v9, %v234_v11  ;;  %v239_v14 = vadd.f32 %v237_v10, %v235_v12 }
  0x8c   : > { %v240_v15 = vmax.f32 %v238_v13, 0.0  ;;  %v241_v16 = vmax.f32 %v239_v14, 0.0 }
  0x8e   : > { %242 = vst [vmem:[%s217_s30] sm:$0xff] %v240_v15 }
  0x8f   : > { %243 = vst [vmem:[%s217_s30 + $0x8] sm:$0xff] %v241_v16 }
  0x90 PF: > { %s14_s15 = sadd.s32 1, %s343_s15  }
  0x91   : > { %p11_p4 = scmp.ge.s32.totalorder %s14_s15, 4  }
  0x93   :  { %13 = sbr.rel (!%p11_p4) target bundleno = 1 (0x1), region = 69 }

// kernel: basic_block_forward.3
= control target key start
LH: loop header
LB: loop body
LE: loop exit
PB: predicated region body
PF: predicated region fallthrough
CT: control target
= control target key end

     0   :  { %s748_s15 = smov 0   ;;  %s866_s0 = inlined_call_operand.vmem [shape: f32[2,8,256], index: 0, kind: input, shape index: {}]   ;;  %s867_s1 = inlined_call_operand.vmem [shape: f32[8,72], index: 1, kind: input, shape index: {}]   ;;  %s868_s2 = inlined_call_operand.vmem [shape: f32[9,256], index: 2, kind: input, shape index: {}]   ;;  %s869_s3 = inlined_call_operand.vmem [shape: f32[2,8,256], index: 3, kind: output, shape index: {0}]   ;;  %s870_s4 = inlined_call_operand.vmem [shape: f32[2,8,2], index: 4, kind: output, shape index: {1}]  }
   0x1 LB: > { %s628_s16 = sadd.s32 4294967295, %s712_s15   ;;  %p632_p0 = scmp.ge.s32.totalorder %s712_s15, 1  ;;  %s712_s15 = sphi %s748_s15, %s15_s15  }
   0x2   : > { %p165_p1 = scmp.lt.s32.totalorder %s712_s15, 3 }
   0x4   : > { %p166_p2 = pnand %p632_p0, %p165_p1 }
   0x5   : > { %s714_s21 = smov (!%p166_p2), 15   ;;  %s715_s22 = smov (!%p166_p2), 17  }
   0x6   : > { %169 = sbr.rel (%p166_p2) target bundleno = 543 (0x21f), region = 32  ;;  %s716_s25 = smov (!%p166_p2), 1  }
   0x7   : > { %s717_s30 = smov (!%p166_p2), 127   ;;  %s718_s7 = smov (!%p166_p2), 113  }
   0x8   : > { %s719_s8 = smov (!%p166_p2), 111   ;;  %p195_p3 = scmp.lt.s32.totalorder (!%p166_p2), %s628_s16, 1 }
   0x9   : > { %s720_s13 = smov (!%p166_p2), 112   ;;  %s722_s14 = smov (!%p166_p2), 16  }
   0xb   : > { %v641_v0 = vld [vmem:[%s868_s2 + $0x6] ss:$8 sm:$0x3]  ;;  %v642_v2 = vld [vmem:[%s868_s2 + $0x10] ss:$8 sm:$0x3] }
   0xc   : > { %v385_v1 = vperm.slane %v641_v0, 0  ;;  %v438_v3 = vperm.slane %v642_v2, 0  ;;  %v640_v4 = vld [vmem:[%s868_s2 + $0x5] ss:$8 sm:$0x3]  ;;  %v386_v6 = vperm.slane %v641_v0, 1 }
   0xd   : > { %v351_v5 = vperm.slane %v640_v4, 0  ;;  %v439_v7 = vperm.slane %v642_v2, 1  ;;  %v352_v8 = vperm.slane %v640_v4, 1  ;;  %v639_v9 = vld [vmem:[%s868_s2 + $0x3] ss:$8 sm:$0x3] }
   0xe   : > { %387 = vrot.lane.b32.xlu1 %v385_v1, %s714_s21  ;;  %440 = vrot.lane.b32.xlu0 %v438_v3, %s715_s22  ;;  %v312_v10 = vperm.slane %v639_v9, 1  ;;  %v311_v11 = vperm.slane %v639_v9, 0  ;;  %v638_v12 = vld [vmem:[%s868_s2 + $0x2] ss:$8 sm:$0x3]  ;;  %s872_s16 = smov (!%p195_p3, %s628_s16), 1 }
   0xf   : > { %353 = vrot.lane.b32.xlu2 %v351_v5, %s716_s25  ;;  %v275_v13 = vperm.slane %v638_v12, 0  ;;  %v218_v14 = vld [vmem:[%s868_s2] ss:$8 sm:$0x3]  ;;  %v276_v16 = vperm.slane %v638_v12, 1  ;;  %s647_s9 = sshll.u32 %s872_s16, 4 }
  0x10   : > { %v220_v15 = vperm.slane %v218_v14, 0  ;;  %v221_v17 = vperm.slane %v218_v14, 1  ;;  %s199_s12 = scalar_lea.vmem %s866_s0, %s647_s9  ;;  %v721_v21 = vmov 0.0   ;;  %vm243_vm0 = vcmask 138240  }
  0x11   : > { %v798_v18 = vld [vmem:[%s199_s12] sm:$0xff]  ;;  %v800_v19 = vld [vmem:[%s199_s12 + $0x8] sm:$0xff]  ;;  %vm298_vm1 = vcmask 121856   ;;  %vm334_vm2 = vcmask 7168   ;;  %vm281_vm3 = vcmask 924672   ;;  %vm317_vm4 = vcmask 1039360  }
  0x12   : > { %v666_v20 = vpack.i.bf16 %v800_v19, %v798_v18  ;;  %vm226_vm5 = vcmask 908288   ;;  %v686_v62 = vpack.i.bf16 %v798_v18, %v721_v21  ;;  %vm425_vm6 = vcmask 916480  }
  0x13   : > { %vm262_vm7 = vcmask 130048   ;;  %vm485_vm8 = vcmask 588800   ;;  %vm538_vm9 = vcmask 15368  }
  0x16   : > { %389 = vrot.lane.b32.xlu1 %v386_v6, %s714_s21  ;;  %442 = vrot.lane.b32.xlu0 %v439_v7, %s715_s22 }
  0x17   : > { %355 = vrot.lane.b32.xlu2 %v352_v8, %s716_s25 }
  0x1e   : > { %315 = vrot.lane.b32.xlu1 %v312_v10, %s717_s30  ;;  %313 = vrot.lane.b32.xlu0 %v311_v11, %s717_s30 }
  0x1f   : > { %277 = vrot.lane.b32.xlu2 %v275_v13, %s718_s7 }
  0x26   : > { %222 = vrot.lane.b32.xlu1 %v220_v15, %s719_s8  ;;  %279 = vrot.lane.b32.xlu0 %v276_v16, %s718_s7 }
  0x27   : > { %224 = vrot.lane.b32.xlu2 %v221_v17, %s719_s8 }
  0x2e   : > { %423 = vrot.lane.b32.xlu0 %v721_v21, %s720_s13 }
  0x2f   : > { %667 = vrot.lane.b32.xlu2 %v666_v20, %s720_s13 }
  0x69   : > { %v354_v24 = vpop.permute.xlu2 %353 }
  0x6a   : > { %v361_v50 = vmul.f32 %v354_v24, %v798_v18 }
  0x71   : > { %v356_v29 = vpop.permute.xlu2 %355 }
  0x72   : > { %v363_v30 = vmul.f32 0.0, %v356_v29  ;;  %v357_v43 = vsel %vm334_vm2, %v354_v24, %v356_v29 }
  0x73   : > { %v362_v51 = vmul.f32 %v357_v43, %v800_v19 }
  0x75   : > { %v681_v57 = vpack.i.bf16 %v362_v51, %v361_v50 }
  0x79   : > { %v278_v38 = vpop.permute.xlu2 %277 }
  0x7a   : > { %v286_v48 = vmul.f32 0.0, %v278_v38 }
  0x80   : > { %v388_v22 = vpop.permute.xlu1 %387  ;;  %v441_v23 = vpop.permute.xlu0 %440 }
  0x81   : > { %v448_v39 = vmul.f32 %v441_v23, %v798_v18  ;;  %v395_v40 = vmul.f32 %v388_v22, %v798_v18  ;;  %v225_v54 = vpop.permute.xlu2 %224 }
  0x82   : > { %v233_v0 = vmul.f32 %v225_v54, %v800_v19 }
  0x88   : > { %v390_v25 = vpop.permute.xlu1 %389  ;;  %v443_v27 = vpop.permute.xlu0 %442 }
  0x89   : > { %v397_v26 = vmul.f32 0.0, %v390_v25  ;;  %v450_v28 = vmul.f32 0.0, %v443_v27  ;;  %v444_v34 = vsel %vm243_vm0, %v441_v23, %v443_v27  ;;  %v391_v35 = vsel %vm298_vm1, %v388_v22, %v390_v25  ;;  %v668_v1 = vpop.permute.xlu2 %667 }
  0x8a   : > { %v449_v36 = vmul.f32 %v444_v34, %v800_v19  ;;  %v396_v37 = vmul.f32 %v391_v35, %v800_v19  ;;  %v670_v9 = vunpack.i.h.bf16 %v668_v1  ;;  %v669_v10 = vunpack.i.l.bf16 %v668_v1 }
  0x8b   : > { %405 = vrot.lane.b32.xlu2 %v397_v26, %s718_s7  ;;  %458 = vrot.lane.b32.xlu1 %v450_v28, %s719_s8 }
  0x8c   : > { %v671_v42 = vpack.i.bf16 %v449_v36, %v448_v39  ;;  %v676_v45 = vpack.i.bf16 %v396_v37, %v395_v40  ;;  %v426_v21 = vsel %vm425_vm6, %v669_v10, %v670_v9 }
  0x90   : > { %v316_v31 = vpop.permute.xlu1 %315  ;;  %v314_v33 = vpop.permute.xlu0 %313 }
  0x91   : > { %v324_v32 = vmul.f32 %v316_v31, %v800_v19  ;;  %v318_v47 = vsel %vm317_vm4, %v314_v33, %v316_v31  ;;  %v322_v52 = vmul.f32 0.0, %v314_v33 }
  0x92   : > { %v323_v53 = vmul.f32 %v318_v47, %v798_v18 }
  0x93   : > { %332 = vrot.lane.b32.xlu0 %v324_v32, %s716_s25  ;;  %371 = vrot.lane.b32.xlu1 %v363_v30, %s717_s30 }
  0x94   : > { %v691_v59 = vpack.i.bf16 %v323_v53, %v322_v52 }
  0x98   : > { %v280_v41 = vpop.permute.xlu0 %279  ;;  %v223_v55 = vpop.permute.xlu1 %222 }
  0x99   : > { %v288_v44 = vmul.f32 %v280_v41, %v800_v19  ;;  %v282_v46 = vsel %vm281_vm3, %v278_v38, %v280_v41  ;;  %v227_v58 = vsel %vm226_vm5, %v223_v55, %v225_v54  ;;  %v231_v60 = vmul.f32 0.0, %v223_v55 }
  0x9a   : > { %v287_v49 = vmul.f32 %v282_v46, %v798_v18  ;;  %v232_v61 = vmul.f32 %v227_v58, %v798_v18  ;;  %v466_v46 = vld [vmem:[%s867_s1] sm:$0xff] }
  0x9b   : > { %672 = vrot.lane.b32.xlu0 %v671_v42, %s719_s8  ;;  %296 = vrot.lane.b32.xlu2 %v288_v44, %s714_s21 }
  0x9c   : > { %677 = vrot.lane.b32.xlu1 %v676_v45, %s718_s7  ;;  %v696_v56 = vpack.i.bf16 %v287_v49, %v286_v48  ;;  %v701_v63 = vpack.i.bf16 %v232_v61, %v231_v60 }
  0xa0   : > { %v424_v2 = vpop.permute.xlu0 %423 }
  0xa1   : > { %v427_v22 = vsel %vm425_vm6, %v670_v9, %v424_v2 }
  0xa3   : > { %682 = vrot.lane.b32.xlu0 %v681_v57, %s717_s30  ;;  %692 = vrot.lane.b32.xlu2 %v691_v59, %s716_s25 }
  0xa4   : > { %697 = vrot.lane.b32.xlu1 %v696_v56, %s714_s21  ;;  %s204_s21 = scalar_lea.vmem %s869_s3, %s647_s9 }
  0xab   : > { %687 = vrot.lane.b32.xlu0 %v686_v62, %s722_s14  ;;  %702 = vrot.lane.b32.xlu2 %v701_v63, %s715_s22 }
  0xac   : > { %260 = vrot.lane.b32.xlu1 %v800_v19, %s722_s14 }
  0xb3   : > { %241 = vrot.lane.b32.xlu0 %v233_v0, %s715_s22  ;;  %s637_s22 = sshll.u32 %s872_s16, 3 }
  0xb4   : > { %s208_s25 = scalar_lea.vmem %s870_s4, %s637_s22 }
  0xe5   : > { %v406_v4 = vpop.permute.xlu2 %405 }
  0xf5   : > { %v297_v7 = vpop.permute.xlu2 %296 }
  0xfd   : > { %v459_v3 = vpop.permute.xlu1 %458  ;;  %v693_v20 = vpop.permute.xlu2 %692 }
  0xfe   : > { %v695_v29 = vunpack.i.h.bf16 %v693_v20  ;;  %v694_v30 = vunpack.i.l.bf16 %v693_v20 }
 0x100   : > { %v335_v36 = vsel %vm334_vm2, %v694_v30, %v695_v29 }
 0x105   : > { %v333_v5 = vpop.permute.xlu0 %332  ;;  %v372_v6 = vpop.permute.xlu1 %371 }
 0x106   : > { %v703_v34 = vpop.permute.xlu2 %702  ;;  %v336_v37 = vsel %vm334_vm2, %v695_v29, %v333_v5 }
 0x107   : > { %v705_v39 = vunpack.i.h.bf16 %v703_v34  ;;  %v704_v41 = vunpack.i.l.bf16 %v703_v34 }
 0x109   : > { %v244_v47 = vsel %vm243_vm0, %v704_v41, %v705_v39 }
 0x10d   : > { %v673_v8 = vpop.permute.xlu0 %672 }
 0x10e   : > { %v675_v11 = vunpack.i.h.bf16 %v673_v8  ;;  %v674_v12 = vunpack.i.l.bf16 %v673_v8  ;;  %v678_v13 = vpop.permute.xlu1 %677 }
 0x10f   : > { %v680_v14 = vunpack.i.h.bf16 %v678_v13  ;;  %v679_v15 = vunpack.i.l.bf16 %v678_v13 }
 0x110   : > { %v460_v16 = vsel %vm226_vm5, %v674_v12, %v675_v11  ;;  %v461_v17 = vsel %vm226_vm5, %v675_v11, %v459_v3 }
 0x111   : > { %496 = vmatpush.msra.mxu0 %v460_v16  ;;  %516 = vmatpush.msra.mxu1 %v461_v17  ;;  %v407_v23 = vsel %vm281_vm3, %v679_v15, %v680_v14  ;;  %v408_v24 = vsel %vm281_vm3, %v680_v14, %v406_v4 }
 0x113   : > { %497 = vmatpush.msra.mxu0 %v426_v21  ;;  %517 = vmatpush.msra.mxu1 %v427_v22 }
 0x115   : > { %498 = vmatpush.msra.mxu0 %v407_v23  ;;  %518 = vmatpush.msra.mxu1 %v408_v24  ;;  %v683_v25 = vpop.permute.xlu0 %682 }
 0x116   : > { %v685_v26 = vunpack.i.h.bf16 %v683_v25  ;;  %v684_v27 = vunpack.i.l.bf16 %v683_v25  ;;  %v698_v28 = vpop.permute.xlu1 %697 }
 0x117   : > { %v699_v31 = vunpack.i.l.bf16 %v698_v28  ;;  %v700_v35 = vunpack.i.h.bf16 %v698_v28 }
 0x118   : > { %v373_v32 = vsel %vm317_vm4, %v684_v27, %v685_v26  ;;  %v374_v33 = vsel %vm317_vm4, %v685_v26, %v372_v6 }
 0x119   : > { %499 = vmatpush.msra.mxu0 %v373_v32  ;;  %519 = vmatpush.msra.mxu1 %v374_v33  ;;  %v299_v38 = vsel %vm298_vm1, %v699_v31, %v700_v35  ;;  %v300_v45 = vsel %vm298_vm1, %v700_v35, %v297_v7 }
 0x11b   : > { %500 = vmatpush.msra.mxu0 %v798_v18  ;;  %520 = vmatpush.msra.mxu1 %v800_v19 }
 0x11d   : > { %v688_v40 = vpop.permute.xlu0 %687  ;;  %501 = vmatpush.msra.mxu0 %v335_v36  ;;  %521 = vmatpush.msra.mxu1 %v336_v37 }
 0x11e   : > { %v690_v42 = vunpack.i.h.bf16 %v688_v40  ;;  %v689_v43 = vunpack.i.l.bf16 %v688_v40  ;;  %v261_v44 = vpop.permute.xlu1 %260 }
 0x11f   : > { %502 = vmatpush.msra.mxu0 %v299_v38  ;;  %522 = vmatpush.msra.mxu1 %v300_v45 }
 0x120   : > { %v263_v18 = vsel %vm262_vm7, %v689_v43, %v690_v42  ;;  %v264_v19 = vsel %vm262_vm7, %v690_v42, %v261_v44 }
 0x121   : > { %503 = vmatpush.msra.mxu0 %v263_v18  ;;  %523 = vmatpush.msra.mxu1 %v264_v19 }
 0x123   : > { %504 = vmatpush.msra.mxu0 %v244_v47 }
 0x124   : > { %643 = vmatmul.msk.f32.vlgmr.msra.gmra.mxu0 %vm485_vm8, %v466_v46 }
 0x125   : > { %v242_v48 = vpop.permute.xlu0 %241 }
 0x126   : > { %v245_v49 = vsel %vm243_vm0, %v705_v39, %v242_v48 }
 0x127   : > { %524 = vmatpush.msra.mxu1 %v245_v49 }
 0x128   : > { %644 = vmatmul.msk.f32.vlgmr.msra.gmra.mxu1 %vm485_vm8, %v466_v46 }
 0x1a1   : > { %v506_v50 = vpop.f32.mrf.mxu0 }
 0x1a2   : > { %540 = vst [vmem:[%s204_s21] sm:$0xff] %v506_v50  ;;  %v533_v51 = vmul.f32 %v506_v50, %v506_v50 }
 0x1a5   : > { %v526_v52 = vpop.f32.mrf.mxu1 }
 0x1a6   : > { %v534_v53 = vmul.f32 %v526_v52, %v526_v52  ;;  %541 = vst [vmem:[%s204_s21 + $0x8] sm:$0xff] %v526_v52  ;;  %v529_v54 = vadd.f32 %v526_v52, %v506_v50 }
 0x1a8   : > { %530 = vadd.xlane.f32.xlu1 %v529_v54  ;;  %v535_v55 = vadd.f32 %v534_v53, %v533_v51 }
 0x1aa   : > { %536 = vadd.xlane.f32.xlu2 %v535_v55 }
 0x21b   : > { %v531_v56 = vpop.xlane.xlu1 %530 }
 0x21c   : > { %532 = vst.msk [vmem:[%s208_s25] sm:$0xff] %vm334_vm2, %v531_v56 }
 0x21d   : > { %v537_v57 = vpop.xlane.xlu2 %536 }
 0x21e   : > { %539 = vst.msk [vmem:[%s208_s25] sm:$0xff] %vm538_vm9, %v537_v57 }
 0x21f PF: > { %s15_s15 = sadd.s32 1, %s712_s15  }
 0x220   : > { %p12_p4 = scmp.ge.s32.totalorder %s15_s15, 4  }
 0x222   :  { %14 = sbr.rel (!%p12_p4) target bundleno = 1 (0x1), region = 79 }

// kernel: basic_block_forward.4
= control target key start
LH: loop header
LB: loop body
LE: loop exit
PB: predicated region body
PF: predicated region fallthrough
CT: control target
= control target key end

     0   :  { %s833_s21 = smov 0   ;;  %s959_s0 = inlined_call_operand.vmem [shape: f32[2,8,256], index: 0, kind: input, shape index: {}]   ;;  %s960_s1 = inlined_call_operand.vmem [shape: f32[8,1], index: 1, kind: input, shape index: {}]   ;;  %s961_s2 = inlined_call_operand.vmem [shape: f32[8,1], index: 2, kind: input, shape index: {}]   ;;  %s962_s3 = inlined_call_operand.vmem [shape: f32[8,72], index: 3, kind: input, shape index: {}]   ;;  %s963_s4 = inlined_call_operand.vmem [shape: f32[9,256], index: 4, kind: input, shape index: {}]   ;;  %s964_s5 = inlined_call_operand.vmem [shape: f32[2,8,256], index: 5, kind: output, shape index: {0}]   ;;  %s965_s6 = inlined_call_operand.vmem [shape: f32[2,8,2], index: 6, kind: output, shape index: {1}]  }
   0x1 LB: > { %s700_s22 = sadd.s32 4294967295, %s786_s21   ;;  %p704_p0 = scmp.ge.s32.totalorder %s786_s21, 1  ;;  %s786_s21 = sphi %s833_s21, %s17_s21  }
   0x2   : > { %p215_p1 = scmp.lt.s32.totalorder %s786_s21, 3 }
   0x4   : > { %p216_p2 = pnand %p704_p0, %p215_p1 }
   0x5   : > { %s789_s29 = smov (!%p216_p2), 17   ;;  %s790_s30 = smov (!%p216_p2), 15  }
   0x6   : > { %219 = sbr.rel (%p216_p2) target bundleno = 539 (0x21b), region = 40  ;;  %s791_s13 = smov (!%p216_p2), 1  }
   0x7   : > { %s792_s16 = smov (!%p216_p2), 127   ;;  %s793_s17 = smov (!%p216_p2), 113  }
   0x8   : > { %s794_s20 = smov (!%p216_p2), 111   ;;  %s796_s23 = smov (!%p216_p2), 112  }
   0x9   : > { %p249_p3 = scmp.lt.s32.totalorder (!%p216_p2), %s700_s22, 1  ;;  %s797_s28 = smov (!%p216_p2), 16  }
   0xb   : > { %v267_v0 = vld [vmem:[%s960_s1] sm:$0xff]  ;;  %v714_v1 = vld [vmem:[%s963_s4 + $0x10] ss:$8 sm:$0x3]  ;;  %v788_v2 = vmov 0   ;;  %v795_v21 = vmov 0.0  }
   0xc   : > { %739 = vset.pattern.permute.xlu0 %v788_v2  ;;  %v510_v3 = vperm.slane %v714_v1, 0  ;;  %v713_v4 = vld [vmem:[%s963_s4 + $0x6] ss:$8 sm:$0x3]  ;;  %v511_v6 = vperm.slane %v714_v1, 1  ;;  %s967_s22 = smov (!%p249_p3, %s700_s22), 1 }
   0xd   : > { %270 = vperm.xlu0 %739, %v267_v0   ;;  %v457_v5 = vperm.slane %v713_v4, 0  ;;  %v275_v7 = vld [vmem:[%s961_s2] sm:$0xff]  ;;  %v458_v8 = vperm.slane %v713_v4, 1  ;;  %s719_s24 = sshll.u32 %s967_s22, 4  ;;  %vm315_vm0 = vcmask 138240   ;;  %vm370_vm1 = vcmask 121856  }
   0xe   : > { %512 = vrot.lane.b32.xlu1 %v510_v3, %s789_s29  ;;  %v712_v9 = vld [vmem:[%s963_s4 + $0x5] ss:$8 sm:$0x3]  ;;  %v711_v12 = vld [vmem:[%s963_s4 + $0x3] ss:$8 sm:$0x3]  ;;  %s253_s27 = scalar_lea.vmem %s959_s0, %s719_s24  ;;  %s258_s9 = scalar_lea.vmem %s964_s5, %s719_s24 }
   0xf   : > { %459 = vrot.lane.b32.xlu2 %v457_v5, %s790_s30  ;;  %v423_v10 = vperm.slane %v712_v9, 0  ;;  %v424_v11 = vperm.slane %v712_v9, 1  ;;  %v383_v13 = vperm.slane %v711_v12, 0  ;;  %v710_v14 = vld [vmem:[%s963_s4 + $0x2] ss:$8 sm:$0x3] }
  0x10   : > { %v384_v15 = vperm.slane %v711_v12, 1  ;;  %v347_v16 = vperm.slane %v710_v14, 0  ;;  %v348_v17 = vperm.slane %v710_v14, 1  ;;  %v290_v18 = vld [vmem:[%s963_s4] ss:$8 sm:$0x3] }
  0x11   : > { %v292_v19 = vperm.slane %v290_v18, 0  ;;  %v293_v20 = vperm.slane %v290_v18, 1  ;;  %v265_v27 = vld [vmem:[%s253_s27] sm:$0xff]  ;;  %v266_v28 = vld [vmem:[%s253_s27 + $0x8] sm:$0xff]  ;;  %vm406_vm2 = vcmask 7168   ;;  %vm389_vm3 = vcmask 1039360  }
  0x12   : > { %vm353_vm4 = vcmask 924672   ;;  %vm298_vm5 = vcmask 908288   ;;  %vm497_vm6 = vcmask 916480   ;;  %vm334_vm7 = vcmask 130048   ;;  %s709_s10 = sshll.u32 %s967_s22, 3 }
  0x13   : > { %vm557_vm8 = vcmask 588800   ;;  %vm610_vm9 = vcmask 15368  }
  0x15   : > { %278 = vperm.xlu0 %739, %v275_v7  }
  0x16   : > { %514 = vrot.lane.b32.xlu1 %v511_v6, %s789_s29 }
  0x17   : > { %461 = vrot.lane.b32.xlu2 %v458_v8, %s790_s30 }
  0x1d   : > { %425 = vrot.lane.b32.xlu0 %v423_v10, %s791_s13 }
  0x1e   : > { %427 = vrot.lane.b32.xlu1 %v424_v11, %s791_s13 }
  0x1f   : > { %385 = vrot.lane.b32.xlu2 %v383_v13, %s792_s16 }
  0x25   : > { %387 = vrot.lane.b32.xlu0 %v384_v15, %s792_s16 }
  0x26   : > { %349 = vrot.lane.b32.xlu1 %v347_v16, %s793_s17 }
  0x27   : > { %351 = vrot.lane.b32.xlu2 %v348_v17, %s793_s17 }
  0x2d   : > { %294 = vrot.lane.b32.xlu0 %v292_v19, %s794_s20 }
  0x2e   : > { %296 = vrot.lane.b32.xlu1 %v293_v20, %s794_s20 }
  0x2f   : > { %495 = vrot.lane.b32.xlu2 %v795_v21, %s796_s23 }
  0x69   : > { %v460_v22 = vpop.permute.xlu2 %459 }
  0x71   : > { %v462_v23 = vpop.permute.xlu2 %461 }
  0x72   : > { %v469_v24 = vmul.f32 0.0, %v462_v23  ;;  %v463_v47 = vsel %vm370_vm1, %v460_v22, %v462_v23 }
  0x74   : > { %477 = vrot.lane.b32.xlu1 %v469_v24, %s793_s17 }
  0x79   : > { %v386_v40 = vpop.permute.xlu2 %385 }
  0x7a   : > { %v394_v52 = vmul.f32 0.0, %v386_v40 }
  0x7f   : > { %v271_v25 = vpop.permute.xlu0 %270 }
  0x80   : > { %v513_v26 = vpop.permute.xlu1 %512  ;;  %v273_v29 = vmul.f32 %v271_v25, %v265_v27  ;;  %v274_v30 = vmul.f32 %v271_v25, %v266_v28 }
  0x81   : > { %v352_v57 = vpop.permute.xlu2 %351 }
  0x87   : > { %v279_v31 = vpop.permute.xlu0 %278 }
  0x88   : > { %v281_v32 = vadd.f32 %v279_v31, %v273_v29  ;;  %v282_v33 = vadd.f32 %v279_v31, %v274_v30  ;;  %v515_v34 = vpop.permute.xlu1 %514 }
  0x89   : > { %v522_v35 = vmul.f32 0.0, %v515_v34  ;;  %v516_v41 = vsel %vm315_vm0, %v513_v26, %v515_v34  ;;  %v496_v12 = vpop.permute.xlu2 %495 }
  0x8a   : > { %v890_v36 = vmax.f32 %v281_v32, 0.0  ;;  %v892_v37 = vmax.f32 %v282_v33, 0.0 }
  0x8b   : > { %530 = vrot.lane.b32.xlu0 %v522_v35, %s794_s20 }
  0x8c   : > { %v745_v38 = vpack.i.bf16 %v890_v36, %v795_v21  ;;  %v740_v39 = vpack.i.bf16 %v892_v37, %v890_v36  ;;  %v521_v43 = vmul.f32 %v516_v41, %v892_v37  ;;  %v520_v45 = vmul.f32 %v513_v26, %v890_v36 }
  0x8d   : > { %v467_v50 = vmul.f32 %v460_v22, %v890_v36  ;;  %v468_v51 = vmul.f32 %v463_v47, %v892_v37  ;;  %v360_v5 = vmul.f32 %v352_v57, %v892_v37 }
  0x8e   : > { %746 = vrot.lane.b32.xlu2 %v745_v38, %s797_s28  ;;  %741 = vrot.lane.b32.xlu1 %v740_v39, %s796_s23  ;;  %v750_v48 = vpack.i.bf16 %v521_v43, %v520_v45 }
  0x8f   : > { %v426_v42 = vpop.permute.xlu0 %425  ;;  %v755_v59 = vpack.i.bf16 %v468_v51, %v467_v50 }
  0x90   : > { %v428_v44 = vpop.permute.xlu1 %427  ;;  %v433_v60 = vmul.f32 %v426_v42, %v890_v36 }
  0x91   : > { %v435_v46 = vmul.f32 0.0, %v428_v44  ;;  %v429_v49 = vsel %vm406_vm2, %v426_v42, %v428_v44 }
  0x92   : > { %v434_v54 = vmul.f32 %v429_v49, %v892_v37 }
  0x93   : > { %443 = vrot.lane.b32.xlu0 %v435_v46, %s792_s16 }
  0x94   : > { %v760_v63 = vpack.i.bf16 %v434_v54, %v433_v60 }
  0x96   : > { %751 = vrot.lane.b32.xlu2 %v750_v48, %s794_s20 }
  0x97   : > { %v388_v53 = vpop.permute.xlu0 %387 }
  0x98   : > { %v390_v55 = vsel %vm389_vm3, %v386_v40, %v388_v53  ;;  %v350_v56 = vpop.permute.xlu1 %349  ;;  %v396_v6 = vmul.f32 %v388_v53, %v892_v37 }
  0x99   : > { %v395_v58 = vmul.f32 %v390_v55, %v890_v36  ;;  %v354_v61 = vsel %vm353_vm4, %v350_v56, %v352_v57  ;;  %v358_v0 = vmul.f32 0.0, %v350_v56 }
  0x9a   : > { %v359_v1 = vmul.f32 %v354_v61, %v890_v36 }
  0x9b   : > { %756 = vrot.lane.b32.xlu0 %v755_v59, %s793_s17  ;;  %v765_v62 = vpack.i.bf16 %v395_v58, %v394_v52  ;;  %v538_v58 = vld [vmem:[%s962_s3] sm:$0xff] }
  0x9c   : > { %v770_v2 = vpack.i.bf16 %v359_v1, %v358_v0 }
  0x9d   : > { %766 = vrot.lane.b32.xlu1 %v765_v62, %s791_s13 }
  0x9e   : > { %761 = vrot.lane.b32.xlu2 %v760_v63, %s792_s16 }
  0x9f   : > { %v295_v4 = vpop.permute.xlu0 %294 }
  0xa0   : > { %v297_v3 = vpop.permute.xlu1 %296  ;;  %v303_v8 = vmul.f32 0.0, %v295_v4 }
  0xa1   : > { %v299_v7 = vsel %vm298_vm5, %v295_v4, %v297_v3  ;;  %v305_v11 = vmul.f32 %v297_v3, %v892_v37 }
  0xa2   : > { %v304_v9 = vmul.f32 %v299_v7, %v890_v36 }
  0xa3   : > { %771 = vrot.lane.b32.xlu0 %v770_v2, %s790_s30 }
  0xa4   : > { %v775_v10 = vpack.i.bf16 %v304_v9, %v303_v8 }
  0xa5   : > { %368 = vrot.lane.b32.xlu1 %v360_v5, %s790_s30 }
  0xa6   : > { %404 = vrot.lane.b32.xlu2 %v396_v6, %s791_s13  ;;  %s262_s13 = scalar_lea.vmem %s965_s6, %s709_s10 }
  0xab   : > { %332 = vrot.lane.b32.xlu0 %v892_v37, %s797_s28 }
  0xad   : > { %776 = vrot.lane.b32.xlu1 %v775_v10, %s789_s29 }
  0xae   : > { %313 = vrot.lane.b32.xlu2 %v305_v11, %s789_s29 }
  0xe6   : > { %v478_v18 = vpop.permute.xlu1 %477 }
  0xe8   : > { %v747_v13 = vpop.permute.xlu2 %746 }
  0xe9   : > { %v749_v42 = vunpack.i.h.bf16 %v747_v13  ;;  %v748_v43 = vunpack.i.l.bf16 %v747_v13 }
  0xf0   : > { %v752_v14 = vpop.permute.xlu2 %751 }
  0xf1   : > { %v754_v15 = vunpack.i.h.bf16 %v752_v14  ;;  %v753_v16 = vunpack.i.l.bf16 %v752_v14 }
  0xf3   : > { %v532_v17 = vsel %vm298_vm5, %v753_v16, %v754_v15 }
  0xf4   : > { %568 = vmatpush.msra.mxu0 %v532_v17 }
  0xf8   : > { %v762_v27 = vpop.permute.xlu2 %761 }
  0xf9   : > { %v764_v29 = vunpack.i.h.bf16 %v762_v27  ;;  %v763_v30 = vunpack.i.l.bf16 %v762_v27 }
  0xfb   : > { %v445_v40 = vsel %vm389_vm3, %v763_v30, %v764_v29 }
  0xfd   : > { %v531_v19 = vpop.permute.xlu0 %530 }
  0xfe   : > { %v533_v20 = vsel %vm298_vm5, %v754_v15, %v531_v19 }
  0xff   : > { %588 = vmatpush.msra.mxu1 %v533_v20 }
 0x100   : > { %v742_v21 = vpop.permute.xlu1 %741  ;;  %v405_v44 = vpop.permute.xlu2 %404 }
 0x101   : > { %v744_v22 = vunpack.i.h.bf16 %v742_v21  ;;  %v743_v23 = vunpack.i.l.bf16 %v742_v21 }
 0x103   : > { %v498_v24 = vsel %vm497_vm6, %v743_v23, %v744_v22  ;;  %v499_v25 = vsel %vm497_vm6, %v744_v22, %v496_v12 }
 0x104   : > { %569 = vmatpush.msra.mxu0 %v498_v24  ;;  %589 = vmatpush.msra.mxu1 %v499_v25 }
 0x105   : > { %v444_v26 = vpop.permute.xlu0 %443 }
 0x106   : > { %v446_v41 = vsel %vm389_vm3, %v764_v29, %v444_v26 }
 0x108   : > { %v314_v57 = vpop.permute.xlu2 %313 }
 0x10d   : > { %v757_v28 = vpop.permute.xlu0 %756 }
 0x10e   : > { %v759_v31 = vunpack.i.h.bf16 %v757_v28  ;;  %v758_v32 = vunpack.i.l.bf16 %v757_v28 }
 0x10f   : > { %v767_v33 = vpop.permute.xlu1 %766 }
 0x110   : > { %v479_v34 = vsel %vm353_vm4, %v758_v32, %v759_v31  ;;  %v480_v35 = vsel %vm353_vm4, %v759_v31, %v478_v18  ;;  %v769_v38 = vunpack.i.h.bf16 %v767_v33  ;;  %v768_v39 = vunpack.i.l.bf16 %v767_v33 }
 0x111   : > { %570 = vmatpush.msra.mxu0 %v479_v34  ;;  %590 = vmatpush.msra.mxu1 %v480_v35 }
 0x112   : > { %v407_v48 = vsel %vm406_vm2, %v768_v39, %v769_v38  ;;  %v408_v49 = vsel %vm406_vm2, %v769_v38, %v405_v44 }
 0x113   : > { %571 = vmatpush.msra.mxu0 %v445_v40  ;;  %591 = vmatpush.msra.mxu1 %v446_v41 }
 0x115   : > { %572 = vmatpush.msra.mxu0 %v890_v36  ;;  %592 = vmatpush.msra.mxu1 %v892_v37  ;;  %v772_v45 = vpop.permute.xlu0 %771  ;;  %v335_v36 = vsel %vm334_vm7, %v748_v43, %v749_v42 }
 0x116   : > { %v774_v46 = vunpack.i.h.bf16 %v772_v45  ;;  %v773_v47 = vunpack.i.l.bf16 %v772_v45 }
 0x117   : > { %v369_v50 = vpop.permute.xlu1 %368  ;;  %573 = vmatpush.msra.mxu0 %v407_v48  ;;  %593 = vmatpush.msra.mxu1 %v408_v49 }
 0x118   : > { %v371_v51 = vsel %vm370_vm1, %v773_v47, %v774_v46  ;;  %v372_v52 = vsel %vm370_vm1, %v774_v46, %v369_v50 }
 0x119   : > { %574 = vmatpush.msra.mxu0 %v371_v51  ;;  %594 = vmatpush.msra.mxu1 %v372_v52 }
 0x11b   : > { %575 = vmatpush.msra.mxu0 %v335_v36 }
 0x11d   : > { %v333_v37 = vpop.permute.xlu0 %332 }
 0x11e   : > { %v336_v53 = vsel %vm334_vm7, %v749_v42, %v333_v37 }
 0x11f   : > { %595 = vmatpush.msra.mxu1 %v336_v53  ;;  %v777_v54 = vpop.permute.xlu1 %776 }
 0x120   : > { %v779_v55 = vunpack.i.h.bf16 %v777_v54  ;;  %v778_v56 = vunpack.i.l.bf16 %v777_v54 }
 0x122   : > { %v316_v59 = vsel %vm315_vm0, %v778_v56, %v779_v55  ;;  %v317_v60 = vsel %vm315_vm0, %v779_v55, %v314_v57 }
 0x123   : > { %576 = vmatpush.msra.mxu0 %v316_v59  ;;  %596 = vmatpush.msra.mxu1 %v317_v60 }
 0x124   : > { %715 = vmatmul.msk.f32.vlgmr.msra.gmra.mxu0 %vm557_vm8, %v538_v58  ;;  %716 = vmatmul.msk.f32.vlgmr.msra.gmra.mxu1 %vm557_vm8, %v538_v58 }
 0x1a1   : > { %v578_v61 = vpop.f32.mrf.mxu0  ;;  %v598_v62 = vpop.f32.mrf.mxu1 }
 0x1a2   : > { %v605_v63 = vmul.f32 %v578_v61, %v578_v61  ;;  %612 = vst [vmem:[%s258_s9] sm:$0xff] %v578_v61  ;;  %v606_v0 = vmul.f32 %v598_v62, %v598_v62  ;;  %v601_v1 = vadd.f32 %v598_v62, %v578_v61 }
 0x1a3   : > { %613 = vst [vmem:[%s258_s9 + $0x8] sm:$0xff] %v598_v62 }
 0x1a4   : > { %602 = vadd.xlane.f32.xlu0 %v601_v1  ;;  %v607_v2 = vadd.f32 %v606_v0, %v605_v63 }
 0x1a6   : > { %608 = vadd.xlane.f32.xlu1 %v607_v2 }
 0x217   : > { %v603_v3 = vpop.xlane.xlu0 %602 }
 0x218   : > { %604 = vst.msk [vmem:[%s262_s13] sm:$0xff] %vm406_vm2, %v603_v3 }
 0x219   : > { %v609_v4 = vpop.xlane.xlu1 %608 }
 0x21a   : > { %611 = vst.msk [vmem:[%s262_s13] sm:$0xff] %vm610_vm9, %v609_v4 }
 0x21b PF: > { %s17_s21 = sadd.s32 1, %s786_s21  }
 0x21c   : > { %p14_p4 = scmp.ge.s32.totalorder %s17_s21, 4  }
 0x21e   :  { %16 = sbr.rel (!%p14_p4) target bundleno = 1 (0x1), region = 87 }

</bundles_post_ra>
